<compile_context>
chip_gen: v7x
topology: tpu7x:2x2x1
jax: 0.10.0
libtpu: 0.0.40
codegen_flags: <defaults>
</compile_context>

<pallas_src>
import numpy as np
import jax
import jax.numpy as jnp
from jax.experimental import pallas as pl
from jax.experimental.pallas import tpu as pltpu

# ---------------- model config (act_type=2 -> Tanh, the module default) -----
RNN_UNITS = (4, 32, 3)          # (gru input size, gru hidden, z dim)
RNN_FINAL_INPUT = 4             # final_input_size for Wx
RNN_FINAL_UNIT = (32, 32, 3)    # Wz = Net: Linear(32,32)+tanh, Linear(32,3)
NN_UNITS = (5, 32, 1)           # nn_model = Net: input = 2 + z dim

H = RNN_UNITS[1]
N_OUT = RNN_UNITS[2]
LANE = 32          # lane width of the narrow weight / bias / output buffers
WHH_LANES = 128    # lane width of the fused GRU hidden-weight block
XPAD = 8           # padded feature width of the packed x buffer

# ---------------- packed-weight block layout (rows are 8-aligned) -----------
_W_BLOCKS = [
    ("ih_r", 8), ("ih_z", 8), ("ih_n", 8),        # GRU input weights (T), 4x32 real
    ("wx", 8), ("wh", 32),                        # Wx.T, Wh.T
    ("wz0", 32), ("wz1", 32),                     # Wz hidden.T, Wz fc.T
    ("nn0_e", 8), ("nn0_z", 32), ("nn1", 32),     # nn_model forward weights
    ("bk_e", 32), ("bk_z", 32),                   # nn0 (backward), split by cols
]
_W_OFF = {}
_off = 0
for _name, _rows in _W_BLOCKS:
    _W_OFF[_name] = (_off, _rows)
    _off += _rows
W_PACK_ROWS = _off  # 264

# bias-pack row indices
(B_R, B_Z, B_IN, B_HN, B_H, B_WZ0, B_WZ1, B_NN0, B_NN1,
 NN1_ROW, INV_E, INV_S, MEAN_S) = range(13)
B_PACK_ROWS = 16


# ---------------- Pallas kernel ----------------------------------------------
def _make_kernel(t_gru, b_pad):
    Bp = b_pad

    def kernel(x_ref, w_ref, whh_ref, b_ref, out_ref):
        f32 = jnp.float32
        bf16 = jnp.bfloat16

        def wblk(name):
            off, rows = _W_OFF[name]
            return w_ref[off:off + rows, :].astype(bf16)     # bf16 MXU operand

        def brow(idx):
            return b_ref[idx:idx + 1, :]

        def dot(a, b):
            return jnp.dot(a, b, preferred_element_type=f32)

        def sigmoid(v):
            # EUP exp + approx reciprocal (vrcp fast path); stays f32.
            return pl.reciprocal(1.0 + jnp.exp(-v), approx=True)

        # ---- hoisted weight loads / casts (once, off the serial chain) ------
        w_ih_r, w_ih_z, w_ih_n = wblk("ih_r"), wblk("ih_z"), wblk("ih_n")
        w_wx, w_wh = wblk("wx"), wblk("wh")
        w_wz0, w_wz1 = wblk("wz0"), wblk("wz1")
        w_nn0_e, w_nn0_z, w_nn1 = wblk("nn0_e"), wblk("nn0_z"), wblk("nn1")
        w_bk_e, w_bk_z = wblk("bk_e"), wblk("bk_z")
        w_hh = whh_ref[...].astype(bf16)          # (H, 128): [r | z | n | pad]

        b_r, b_z, b_in, b_hn = brow(B_R), brow(B_Z), brow(B_IN), brow(B_HN)
        b_h, b_wz0, b_wz1 = brow(B_H), brow(B_WZ0), brow(B_WZ1)
        b_nn0, b_nn1 = brow(B_NN0), brow(B_NN1)
        nn1_row = brow(NN1_ROW)
        inv_e, inv_s, mean_s = brow(INV_E), brow(INV_S), brow(MEAN_S)

        x_seq = x_ref[0:t_gru * Bp, :].astype(bf16)                 # (T1*Bp, XPAD)
        x_last = x_ref[t_gru * Bp:(t_gru + 1) * Bp, :].astype(bf16)  # (Bp, XPAD)

        # ---- GRU input projections: ONE matmul per gate for all timesteps ---
        # (b_hh_r / b_hh_z are pre-folded into b_r / b_z in the wrapper)
        gi_r = dot(x_seq, w_ih_r) + b_r
        gi_z = dot(x_seq, w_ih_z) + b_z
        gi_n = dot(x_seq, w_ih_n) + b_in

        b_hnB = jnp.broadcast_to(b_hn, (Bp, H))            # hoisted broadcasts
        nn1_rowB = jnp.broadcast_to(nn1_row, (Bp, H))

        # ---- GRU recurrence: ONE fused bf16 matmul per step ------------------
        h = jnp.zeros((Bp, H), f32)
        for t in range(t_gru):
            lo = t * Bp                                    # 8-aligned slices
            gh = dot(h.astype(bf16), w_hh)                 # (Bp, 128), f32 acc
            r = sigmoid(gi_r[lo:lo + Bp] + gh[:, 0:H])
            zg = sigmoid(gi_z[lo:lo + Bp] + gh[:, H:2 * H])
            n = jnp.tanh(gi_n[lo:lo + Bp] + r * (gh[:, 2 * H:3 * H] + b_hnB))
            h = (1.0 - zg) * n + zg * h
        h_old = h

        # ---- h_new, then Wz on the stacked [h_old; h_new] (one MLP pass) -----
        h_new = jnp.tanh(dot(x_last, w_wx) + dot(h_old.astype(bf16), w_wh) + b_h)
        h_stack = jnp.concatenate([h_old, h_new], axis=0)          # (2Bp, H)
        t0 = jnp.tanh(dot(h_stack.astype(bf16), w_wz0) + b_wz0)
        z_stack = dot(t0.astype(bf16), w_wz1) + b_wz1              # lanes 0:3 real
        z_old = z_stack[0:Bp]
        z_new = z_stack[Bp:2 * Bp]
        dzdt = z_new - z_old                                       # lanes >=3 stay 0

        # ---- nn_model forward + analytic input gradient (tanh backprop) -----
        # hidden pre-act = e_new @ W0_e + z_new @ W0_z + b0   (no lane concat)
        t1 = jnp.tanh(dot(x_last, w_nn0_e) + dot(z_new.astype(bf16), w_nn0_z)
                      + b_nn0)
        f_hat = dot(t1.astype(bf16), w_nn1) + b_nn1                # lane 0 = F_hat0
        g0 = nn1_rowB * (1.0 - t1 * t1)
        g0b = g0.astype(bf16)
        df_e = dot(g0b, w_bk_e)                                    # lanes 0:2 = dF/de
        df_z = dot(g0b, w_bk_z)                                    # lanes 0:3 = dF/dz

        # scaler math with precomputed reciprocals (zero-padded rows keep
        # every lane >= 2 exactly zero)
        s_hat = (df_e * inv_e - mean_s) * inv_s
        d_hat = -jnp.sum(df_z * dzdt, axis=1, keepdims=True)

        # ---- single packed output slab (one writeback DMA) ------------------
        out_ref[0 * Bp:1 * Bp, :] = s_hat
        out_ref[1 * Bp:2 * Bp, :] = z_new
        out_ref[2 * Bp:3 * Bp, :] = f_hat
        out_ref[3 * Bp:4 * Bp, :] = jnp.broadcast_to(d_hat, (Bp, LANE))
        out_ref[4 * Bp:5 * Bp, :] = dzdt

    return kernel


# ---------------- wrapper-side packing ---------------------------------------
def _pad_block(w, rows, lanes=LANE):
    out = jnp.zeros((rows, lanes), jnp.float32)
    return out.at[:w.shape[0], :w.shape[1]].set(w.astype(jnp.float32))


def _row(v, lanes=LANE):
    out = jnp.zeros((1, lanes), jnp.float32)
    return out.at[0, :v.shape[0]].set(v.astype(jnp.float32))


def pack_params(params):
    """Pack all static weights/biases ONCE at init (not per forward call)."""
    n_in, h, n_out = RNN_UNITS
    w_ih, w_hh = params["gru_w_ih"], params["gru_w_hh"]
    nn0 = params["nn_ws"][0]                       # (32, 5) = (out, [e(2), z(3)])
    blocks = {
        "ih_r": w_ih[0:h].T, "ih_z": w_ih[h:2 * h].T, "ih_n": w_ih[2 * h:].T,
        "wx": params["wx_w"].T, "wh": params["wh_w"].T,
        "wz0": params["wz_ws"][0].T, "wz1": params["wz_ws"][1].T,
        "nn0_e": nn0[:, 0:2].T, "nn0_z": nn0[:, 2:2 + n_out].T,
        "nn1": params["nn_ws"][1].T,
        "bk_e": nn0[:, 0:2], "bk_z": nn0[:, 2:2 + n_out],
    }
    w_pack = jnp.concatenate(
        [_pad_block(blocks[name], rows) for name, rows in _W_BLOCKS], axis=0)

    # fused hidden-gate weights, lane-packed: [Whh_r.T | Whh_z.T | Whh_n.T]
    whh = jnp.concatenate([w_hh[0:h].T, w_hh[h:2 * h].T, w_hh[2 * h:].T], axis=1)
    whh_pack = jnp.zeros((h, WHH_LANES), jnp.float32).at[:, :3 * h].set(
        whh.astype(jnp.float32))

    b_ih, b_hh = params["gru_b_ih"], params["gru_b_hh"]
    scale, mean = params["scaler_scale"], params["scaler_mean"]
    rows = [
        _row(b_ih[0:h] + b_hh[0:h]),               # r gate bias (folded)
        _row(b_ih[h:2 * h] + b_hh[h:2 * h]),       # z gate bias (folded)
        _row(b_ih[2 * h:]),                        # n gate input bias
        _row(b_hh[2 * h:]),                        # n gate hidden bias
        _row(params["wx_b"] + params["wh_b"]),     # Wx + Wh bias (folded)
        _row(params["wz_bs"][0]),
        _row(params["wz_bs"][1]),
        _row(params["nn_bs"][0]),
        _row(params["nn_bs"][1]),
        _row(params["nn_ws"][1][0]),               # nn fc weight row (for grad)
        _row(1.0 / scale[0:2]),                    # 1 / std_e
        _row(1.0 / scale[2:4]),                    # 1 / std_s
        _row(mean[2:4]),                           # mean_s
    ]
    rows.append(jnp.zeros((B_PACK_ROWS - len(rows), LANE), jnp.float32))
    b_pack = jnp.concatenate(rows, axis=0)
    return w_pack, whh_pack, b_pack


def pack_x(x):
    B, T, D = x.shape
    n_in = RNN_UNITS[0]
    Bp = ((B + 7) // 8) * 8
    T1 = T - 1
    p = min(D, XPAD)
    xs = jnp.zeros((T1, Bp, XPAD), jnp.float32)
    xs = xs.at[:, :B, :n_in].set(jnp.transpose(x[:, :T1, :n_in], (1, 0, 2)))
    xl = jnp.zeros((Bp, XPAD), jnp.float32).at[:B, :p].set(x[:, -1, :p])
    return jnp.concatenate([xs.reshape(T1 * Bp, XPAD), xl], axis=0), Bp, T1


def tcrnn2_pallas(x, w_pack, whh_pack, b_pack):
    B = x.shape[0]
    x_pack, Bp, T1 = pack_x(x)

    # advisory cost estimate so XLA schedules the tiny call sensibly
    flops = 2 * Bp * (3 * T1 * XPAD * H          # gi projections
                      + T1 * H * 3 * H           # fused recurrence
                      + XPAD * H + H * H         # Wx, Wh
                      + 2 * (2 * H * H)          # wz0/wz1 on stacked rows
                      + XPAD * H + 2 * H * H     # nn0_e, nn0_z, nn1 (approx)
                      + 2 * H * H)               # bk_e, bk_z
    transc = Bp * (3 * T1 * H + 5 * H)
    bytes_acc = 4 * (x_pack.size + w_pack.size + whh_pack.size + b_pack.size
                     + 5 * Bp * LANE)

    vmem = pl.BlockSpec(memory_space=pltpu.MemorySpace.VMEM)
    out = pl.pallas_call(
        _make_kernel(T1, Bp),
        out_shape=jax.ShapeDtypeStruct((5 * Bp, LANE), jnp.float32),
        in_specs=[vmem, vmem, vmem, vmem],
        out_specs=vmem,
        cost_estimate=pl.CostEstimate(flops=flops, transcendentals=transc,
                                      bytes_accessed=bytes_acc),
    )(x_pack, w_pack, whh_pack, b_pack)

    s_hat = out[0 * Bp:0 * Bp + B, 0:2]
    z_new = out[1 * Bp:1 * Bp + B, 0:N_OUT]
    f_hat = out[2 * Bp:2 * Bp + B, 0:NN_UNITS[-1]]
    d_hat = out[3 * Bp:3 * Bp + B, 0:1]
    dzdt = out[4 * Bp:4 * Bp + B, 0:N_OUT]
    return s_hat, z_new, f_hat, d_hat, dzdt


# ---------------- pure-JAX reference (uses jax.grad for the autograd part) ---
def _mlp_fwd(x, ws, bs):
    h = x
    for w, b in zip(ws[:-1], bs[:-1]):
        h = jnp.tanh(jnp.dot(h, w.T) + b)
    return jnp.dot(h, ws[-1].T) + bs[-1]


def _gru_step(h, xt, w_ih, w_hh, b_ih, b_hh, n_hidden):
    gi = jnp.dot(xt, w_ih.T) + b_ih
    gh = jnp.dot(h, w_hh.T) + b_hh
    r = jax.nn.sigmoid(gi[:, :n_hidden] + gh[:, :n_hidden])
    z = jax.nn.sigmoid(gi[:, n_hidden:2 * n_hidden] + gh[:, n_hidden:2 * n_hidden])
    n = jnp.tanh(gi[:, 2 * n_hidden:] + r * gh[:, 2 * n_hidden:])
    return (1.0 - z) * n + z * h


def tcrnn2_ref(x, params):
    B, T, D = x.shape
    n_in, h_dim, n_out = RNN_UNITS
    b_ih = params["gru_b_ih"][None, :]
    b_hh = params["gru_b_hh"][None, :]
    h = jnp.zeros((B, h_dim), jnp.float32)
    for t in range(T - 1):
        h = _gru_step(h, x[:, t, :n_in], params["gru_w_ih"],
                      params["gru_w_hh"], b_ih, b_hh, h_dim)
    wz_ws = params["wz_ws"]; wz_bs = [b[None, :] for b in params["wz_bs"]]
    nn_ws = params["nn_ws"]; nn_bs = [b[None, :] for b in params["nn_bs"]]
    z_old = _mlp_fwd(h, wz_ws, wz_bs)
    inp = x[:, -1, :RNN_FINAL_INPUT]
    h_new = jnp.tanh(inp @ params["wx_w"].T + params["wx_b"]
                     + h @ params["wh_w"].T + params["wh_b"])
    z_new = _mlp_fwd(h_new, wz_ws, wz_bs)
    dzdt = z_new - z_old
    e_new = x[:, -1, :2]
    mlp_in = jnp.concatenate([e_new, z_new], axis=1)
    f_hat0 = _mlp_fwd(mlp_in, nn_ws, nn_bs)
    df = jax.grad(lambda z: jnp.sum(_mlp_fwd(z, nn_ws, nn_bs)))(mlp_in)
    scale = params["scaler_scale"]; mean = params["scaler_mean"]
    std_e = scale[0:2][None, :]; std_s = scale[2:4][None, :]
    mean_s = mean[2:4][None, :]
    s_hat = (df[:, :2] / std_e - mean_s) / std_s
    dfdz = df[:, 2:2 + n_out]
    d_hat0 = -jnp.sum(dfdz * dzdt, axis=1, keepdims=True)
    return s_hat, z_new, f_hat0, d_hat0, dzdt


# ---------------- deterministic parameter init --------------------------------
def init_params(key):
    n_in, h_dim, n_out = RNN_UNITS
    keys = iter(jax.random.split(key, 32))

    def lin(k, out_f, in_f):
        bound = 1.0 / np.sqrt(in_f)
        kw, kb = jax.random.split(k)
        w = jax.random.uniform(kw, (out_f, in_f), jnp.float32, -bound, bound)
        b = jax.random.uniform(kb, (out_f,), jnp.float32, -bound, bound)
        return w, b

    p = {}
    gb = 1.0 / np.sqrt(h_dim)
    p["gru_w_ih"] = jax.random.uniform(next(keys), (3 * h_dim, n_in), jnp.float32, -gb, gb)
    p["gru_w_hh"] = jax.random.uniform(next(keys), (3 * h_dim, h_dim), jnp.float32, -gb, gb)
    p["gru_b_ih"] = jax.random.uniform(next(keys), (3 * h_dim,), jnp.float32, -gb, gb)
    p["gru_b_hh"] = jax.random.uniform(next(keys), (3 * h_dim,), jnp.float32, -gb, gb)
    p["wx_w"], p["wx_b"] = lin(next(keys), h_dim, RNN_FINAL_INPUT)
    p["wh_w"], p["wh_b"] = lin(next(keys), h_dim, h_dim)
    wz_ws, wz_bs = [], []
    for i in range(len(RNN_FINAL_UNIT) - 1):
        w, b = lin(next(keys), RNN_FINAL_UNIT[i + 1], RNN_FINAL_UNIT[i])
        wz_ws.append(w); wz_bs.append(b)
    p["wz_ws"], p["wz_bs"] = wz_ws, wz_bs
    nn_ws, nn_bs = [], []
    for i in range(len(NN_UNITS) - 1):
        w, b = lin(next(keys), NN_UNITS[i + 1], NN_UNITS[i])
        nn_ws.append(w); nn_bs.append(b)
    p["nn_ws"], p["nn_bs"] = nn_ws, nn_bs
    # synthetic StandardScaler statistics (first 4 features are what the model uses)
    p["scaler_mean"] = jnp.array([0.10, -0.20, 0.05, 0.15], jnp.float32)
    p["scaler_scale"] = jnp.array([1.50, 0.80, 2.00, 1.20], jnp.float32)
    return p


if __name__ == "__main__":
    key = jax.random.PRNGKey(0)
    kp, kx = jax.random.split(key)
    params = init_params(kp)

    B, T, D = 4, 8, 4
    x = jax.random.normal(kx, (B, T, D), jnp.float32)

    # Static weight packing runs ONCE here (hoisted off the per-call path).
    w_pack, whh_pack, b_pack = pack_params(params)
    (w_pack, whh_pack, b_pack) = jax.block_until_ready((w_pack, whh_pack, b_pack))

    fwd = jax.jit(tcrnn2_pallas)
    outs = fwd(x, w_pack, whh_pack, b_pack)
    outs = jax.block_until_ready(outs)

    refs = tcrnn2_ref(x, params)
    for o, r in zip(outs, refs):
        assert o.shape == r.shape and o.dtype == r.dtype
        # bf16 MXU operands with f32 accumulation: drift stays well inside 1e-2.
        np.testing.assert_allclose(np.asarray(o), np.asarray(r),
                                   rtol=1e-2, atol=1e-2)

    print("KERNEL_OK")
</pallas_src>

<mosaic_0001>
module attributes {stable_mosaic.version = 11 : i64} {
  func.func @kernel(%arg0: memref<64x8xf32, #tpu.memory_space<vmem>>, %arg1: memref<264x32xf32, #tpu.memory_space<vmem>>, %arg2: memref<32x128xf32, #tpu.memory_space<vmem>>, %arg3: memref<16x32xf32, #tpu.memory_space<vmem>>, %arg4: memref<40x32xf32, #tpu.memory_space<vmem>>) attributes {dimension_semantics = [], scalar_prefetch = 0 : i64, scratch_operands = 0 : i64, tpu.core_type = #tpu.core_type<tc>} {
    %c0 = arith.constant 0 : index
    %c0_0 = arith.constant 0 : index
    %0 = vector.load %arg1[%c0, %c0_0] : memref<264x32xf32, #tpu.memory_space<vmem>>, vector<8x32xf32>
    %1 = arith.truncf %0 : vector<8x32xf32> to vector<8x32xbf16>
    %c8 = arith.constant 8 : index
    %c0_1 = arith.constant 0 : index
    %2 = vector.load %arg1[%c8, %c0_1] : memref<264x32xf32, #tpu.memory_space<vmem>>, vector<8x32xf32>
    %3 = arith.truncf %2 : vector<8x32xf32> to vector<8x32xbf16>
    %c16 = arith.constant 16 : index
    %c0_2 = arith.constant 0 : index
    %4 = vector.load %arg1[%c16, %c0_2] : memref<264x32xf32, #tpu.memory_space<vmem>>, vector<8x32xf32>
    %5 = arith.truncf %4 : vector<8x32xf32> to vector<8x32xbf16>
    %c24 = arith.constant 24 : index
    %c0_3 = arith.constant 0 : index
    %6 = vector.load %arg1[%c24, %c0_3] : memref<264x32xf32, #tpu.memory_space<vmem>>, vector<8x32xf32>
    %7 = arith.truncf %6 : vector<8x32xf32> to vector<8x32xbf16>
    %c32 = arith.constant 32 : index
    %c0_4 = arith.constant 0 : index
    %8 = vector.load %arg1[%c32, %c0_4] : memref<264x32xf32, #tpu.memory_space<vmem>>, vector<32x32xf32>
    %9 = arith.truncf %8 : vector<32x32xf32> to vector<32x32xbf16>
    %c64 = arith.constant 64 : index
    %c0_5 = arith.constant 0 : index
    %10 = vector.load %arg1[%c64, %c0_5] : memref<264x32xf32, #tpu.memory_space<vmem>>, vector<32x32xf32>
    %11 = arith.truncf %10 : vector<32x32xf32> to vector<32x32xbf16>
    %c96 = arith.constant 96 : index
    %c0_6 = arith.constant 0 : index
    %12 = vector.load %arg1[%c96, %c0_6] : memref<264x32xf32, #tpu.memory_space<vmem>>, vector<32x32xf32>
    %13 = arith.truncf %12 : vector<32x32xf32> to vector<32x32xbf16>
    %c128 = arith.constant 128 : index
    %c0_7 = arith.constant 0 : index
    %14 = vector.load %arg1[%c128, %c0_7] : memref<264x32xf32, #tpu.memory_space<vmem>>, vector<8x32xf32>
    %15 = arith.truncf %14 : vector<8x32xf32> to vector<8x32xbf16>
    %c136 = arith.constant 136 : index
    %c0_8 = arith.constant 0 : index
    %16 = vector.load %arg1[%c136, %c0_8] : memref<264x32xf32, #tpu.memory_space<vmem>>, vector<32x32xf32>
    %17 = arith.truncf %16 : vector<32x32xf32> to vector<32x32xbf16>
    %c168 = arith.constant 168 : index
    %c0_9 = arith.constant 0 : index
    %18 = vector.load %arg1[%c168, %c0_9] : memref<264x32xf32, #tpu.memory_space<vmem>>, vector<32x32xf32>
    %19 = arith.truncf %18 : vector<32x32xf32> to vector<32x32xbf16>
    %c200 = arith.constant 200 : index
    %c0_10 = arith.constant 0 : index
    %20 = vector.load %arg1[%c200, %c0_10] : memref<264x32xf32, #tpu.memory_space<vmem>>, vector<32x32xf32>
    %21 = arith.truncf %20 : vector<32x32xf32> to vector<32x32xbf16>
    %c232 = arith.constant 232 : index
    %c0_11 = arith.constant 0 : index
    %22 = vector.load %arg1[%c232, %c0_11] : memref<264x32xf32, #tpu.memory_space<vmem>>, vector<32x32xf32>
    %23 = arith.truncf %22 : vector<32x32xf32> to vector<32x32xbf16>
    %c0_12 = arith.constant 0 : index
    %c0_13 = arith.constant 0 : index
    %24 = vector.load %arg2[%c0_12, %c0_13] : memref<32x128xf32, #tpu.memory_space<vmem>>, vector<32x128xf32>
    %25 = arith.truncf %24 : vector<32x128xf32> to vector<32x128xbf16>
    %c0_14 = arith.constant 0 : index
    %c0_15 = arith.constant 0 : index
    %26 = vector.load %arg3[%c0_14, %c0_15] : memref<16x32xf32, #tpu.memory_space<vmem>>, vector<1x32xf32>
    %c1 = arith.constant 1 : index
    %c0_16 = arith.constant 0 : index
    %27 = vector.load %arg3[%c1, %c0_16] : memref<16x32xf32, #tpu.memory_space<vmem>>, vector<1x32xf32>
    %c2 = arith.constant 2 : index
    %c0_17 = arith.constant 0 : index
    %28 = vector.load %arg3[%c2, %c0_17] : memref<16x32xf32, #tpu.memory_space<vmem>>, vector<1x32xf32>
    %c3 = arith.constant 3 : index
    %c0_18 = arith.constant 0 : index
    %29 = vector.load %arg3[%c3, %c0_18] : memref<16x32xf32, #tpu.memory_space<vmem>>, vector<1x32xf32>
    %c4 = arith.constant 4 : index
    %c0_19 = arith.constant 0 : index
    %30 = vector.load %arg3[%c4, %c0_19] : memref<16x32xf32, #tpu.memory_space<vmem>>, vector<1x32xf32>
    %c5 = arith.constant 5 : index
    %c0_20 = arith.constant 0 : index
    %31 = vector.load %arg3[%c5, %c0_20] : memref<16x32xf32, #tpu.memory_space<vmem>>, vector<1x32xf32>
    %c6 = arith.constant 6 : index
    %c0_21 = arith.constant 0 : index
    %32 = vector.load %arg3[%c6, %c0_21] : memref<16x32xf32, #tpu.memory_space<vmem>>, vector<1x32xf32>
    %c7 = arith.constant 7 : index
    %c0_22 = arith.constant 0 : index
    %33 = vector.load %arg3[%c7, %c0_22] : memref<16x32xf32, #tpu.memory_space<vmem>>, vector<1x32xf32>
    %c8_23 = arith.constant 8 : index
    %c0_24 = arith.constant 0 : index
    %34 = vector.load %arg3[%c8_23, %c0_24] : memref<16x32xf32, #tpu.memory_space<vmem>>, vector<1x32xf32>
    %c9 = arith.constant 9 : index
    %c0_25 = arith.constant 0 : index
    %35 = vector.load %arg3[%c9, %c0_25] : memref<16x32xf32, #tpu.memory_space<vmem>>, vector<1x32xf32>
    %c10 = arith.constant 10 : index
    %c0_26 = arith.constant 0 : index
    %36 = vector.load %arg3[%c10, %c0_26] : memref<16x32xf32, #tpu.memory_space<vmem>>, vector<1x32xf32>
    %c11 = arith.constant 11 : index
    %c0_27 = arith.constant 0 : index
    %37 = vector.load %arg3[%c11, %c0_27] : memref<16x32xf32, #tpu.memory_space<vmem>>, vector<1x32xf32>
    %c12 = arith.constant 12 : index
    %c0_28 = arith.constant 0 : index
    %38 = vector.load %arg3[%c12, %c0_28] : memref<16x32xf32, #tpu.memory_space<vmem>>, vector<1x32xf32>
    %c0_29 = arith.constant 0 : index
    %c0_30 = arith.constant 0 : index
    %39 = vector.load %arg0[%c0_29, %c0_30] : memref<64x8xf32, #tpu.memory_space<vmem>>, vector<56x8xf32>
    %40 = arith.truncf %39 : vector<56x8xf32> to vector<56x8xbf16>
    %c56 = arith.constant 56 : index
    %c0_31 = arith.constant 0 : index
    %41 = vector.load %arg0[%c56, %c0_31] : memref<64x8xf32, #tpu.memory_space<vmem>>, vector<8x8xf32>
    %42 = arith.truncf %41 : vector<8x8xf32> to vector<8x8xbf16>
    %cst = arith.constant dense<0.000000e+00> : vector<56x32xf32>
    %43 = tpu.matmul %40, %1, %cst {dimension_numbers = #tpu.dot_dimension_numbers<[1], [0], [0], [1], [0, 0, 1, 1], [], []>} : vector<56x8xbf16>, vector<8x32xbf16>, vector<56x32xf32> -> vector<56x32xf32>
    %44 = vector.broadcast %26 : vector<1x32xf32> to vector<56x32xf32>
    %45 = arith.addf %43, %44 : vector<56x32xf32>
    %cst_32 = arith.constant dense<0.000000e+00> : vector<56x32xf32>
    %46 = tpu.matmul %40, %3, %cst_32 {dimension_numbers = #tpu.dot_dimension_numbers<[1], [0], [0], [1], [0, 0, 1, 1], [], []>} : vector<56x8xbf16>, vector<8x32xbf16>, vector<56x32xf32> -> vector<56x32xf32>
    %47 = vector.broadcast %27 : vector<1x32xf32> to vector<56x32xf32>
    %48 = arith.addf %46, %47 : vector<56x32xf32>
    %cst_33 = arith.constant dense<0.000000e+00> : vector<56x32xf32>
    %49 = tpu.matmul %40, %5, %cst_33 {dimension_numbers = #tpu.dot_dimension_numbers<[1], [0], [0], [1], [0, 0, 1, 1], [], []>} : vector<56x8xbf16>, vector<8x32xbf16>, vector<56x32xf32> -> vector<56x32xf32>
    %50 = vector.broadcast %28 : vector<1x32xf32> to vector<56x32xf32>
    %51 = arith.addf %49, %50 : vector<56x32xf32>
    %52 = vector.shape_cast %29 : vector<1x32xf32> to vector<1x32xf32>
    %53 = vector.broadcast %52 : vector<1x32xf32> to vector<8x32xf32>
    %54 = vector.shape_cast %35 : vector<1x32xf32> to vector<1x32xf32>
    %55 = vector.broadcast %54 : vector<1x32xf32> to vector<8x32xf32>
    %cst_34 = arith.constant 0.000000e+00 : f32
    %56 = vector.broadcast %cst_34 : f32 to vector<8x32xf32>
    %57 = arith.truncf %56 : vector<8x32xf32> to vector<8x32xbf16>
    %cst_35 = arith.constant dense<0.000000e+00> : vector<8x128xf32>
    %58 = tpu.matmul %57, %25, %cst_35 {dimension_numbers = #tpu.dot_dimension_numbers<[1], [0], [0], [1], [0, 0, 1, 1], [], []>} : vector<8x32xbf16>, vector<32x128xbf16>, vector<8x128xf32> -> vector<8x128xf32>
    %59 = vector.extract_strided_slice %45 {offsets = [0, 0], sizes = [8, 32], strides = [1, 1]} : vector<56x32xf32> to vector<8x32xf32>
    %60 = vector.extract_strided_slice %58 {offsets = [0, 0], sizes = [8, 32], strides = [1, 1]} : vector<8x128xf32> to vector<8x32xf32>
    %61 = arith.addf %59, %60 : vector<8x32xf32>
    %cst_36 = arith.constant 0.000000e+00 : f32
    %62 = vector.broadcast %cst_36 : f32 to vector<8x32xf32>
    %63 = arith.subf %62, %61 : vector<8x32xf32>
    %64 = math.exp %63 : vector<8x32xf32>
    %cst_37 = arith.constant 1.000000e+00 : f32
    %65 = vector.broadcast %cst_37 : f32 to vector<8x32xf32>
    %66 = arith.addf %65, %64 : vector<8x32xf32>
    %67 = tpu.reciprocal %66 {approx = true} : vector<8x32xf32> -> vector<8x32xf32>
    %68 = vector.extract_strided_slice %48 {offsets = [0, 0], sizes = [8, 32], strides = [1, 1]} : vector<56x32xf32> to vector<8x32xf32>
    %69 = vector.extract_strided_slice %58 {offsets = [0, 32], sizes = [8, 32], strides = [1, 1]} : vector<8x128xf32> to vector<8x32xf32>
    %70 = arith.addf %68, %69 : vector<8x32xf32>
    %cst_38 = arith.constant 0.000000e+00 : f32
    %71 = vector.broadcast %cst_38 : f32 to vector<8x32xf32>
    %72 = arith.subf %71, %70 : vector<8x32xf32>
    %73 = math.exp %72 : vector<8x32xf32>
    %cst_39 = arith.constant 1.000000e+00 : f32
    %74 = vector.broadcast %cst_39 : f32 to vector<8x32xf32>
    %75 = arith.addf %74, %73 : vector<8x32xf32>
    %76 = tpu.reciprocal %75 {approx = true} : vector<8x32xf32> -> vector<8x32xf32>
    %77 = vector.extract_strided_slice %51 {offsets = [0, 0], sizes = [8, 32], strides = [1, 1]} : vector<56x32xf32> to vector<8x32xf32>
    %78 = vector.extract_strided_slice %58 {offsets = [0, 64], sizes = [8, 32], strides = [1, 1]} : vector<8x128xf32> to vector<8x32xf32>
    %79 = arith.addf %78, %53 : vector<8x32xf32>
    %80 = arith.mulf %67, %79 : vector<8x32xf32>
    %81 = arith.addf %77, %80 : vector<8x32xf32>
    %82 = math.tanh %81 : vector<8x32xf32>
    %cst_40 = arith.constant 1.000000e+00 : f32
    %83 = vector.broadcast %cst_40 : f32 to vector<8x32xf32>
    %84 = arith.subf %83, %76 : vector<8x32xf32>
    %85 = arith.mulf %84, %82 : vector<8x32xf32>
    %86 = arith.mulf %76, %56 : vector<8x32xf32>
    %87 = arith.addf %85, %86 : vector<8x32xf32>
    %88 = arith.truncf %87 : vector<8x32xf32> to vector<8x32xbf16>
    %cst_41 = arith.constant dense<0.000000e+00> : vector<8x128xf32>
    %89 = tpu.matmul %88, %25, %cst_41 {dimension_numbers = #tpu.dot_dimension_numbers<[1], [0], [0], [1], [0, 0, 1, 1], [], []>} : vector<8x32xbf16>, vector<32x128xbf16>, vector<8x128xf32> -> vector<8x128xf32>
    %90 = vector.extract_strided_slice %45 {offsets = [8, 0], sizes = [8, 32], strides = [1, 1]} : vector<56x32xf32> to vector<8x32xf32>
    %91 = vector.extract_strided_slice %89 {offsets = [0, 0], sizes = [8, 32], strides = [1, 1]} : vector<8x128xf32> to vector<8x32xf32>
    %92 = arith.addf %90, %91 : vector<8x32xf32>
    %cst_42 = arith.constant 0.000000e+00 : f32
    %93 = vector.broadcast %cst_42 : f32 to vector<8x32xf32>
    %94 = arith.subf %93, %92 : vector<8x32xf32>
    %95 = math.exp %94 : vector<8x32xf32>
    %cst_43 = arith.constant 1.000000e+00 : f32
    %96 = vector.broadcast %cst_43 : f32 to vector<8x32xf32>
    %97 = arith.addf %96, %95 : vector<8x32xf32>
    %98 = tpu.reciprocal %97 {approx = true} : vector<8x32xf32> -> vector<8x32xf32>
    %99 = vector.extract_strided_slice %48 {offsets = [8, 0], sizes = [8, 32], strides = [1, 1]} : vector<56x32xf32> to vector<8x32xf32>
    %100 = vector.extract_strided_slice %89 {offsets = [0, 32], sizes = [8, 32], strides = [1, 1]} : vector<8x128xf32> to vector<8x32xf32>
    %101 = arith.addf %99, %100 : vector<8x32xf32>
    %cst_44 = arith.constant 0.000000e+00 : f32
    %102 = vector.broadcast %cst_44 : f32 to vector<8x32xf32>
    %103 = arith.subf %102, %101 : vector<8x32xf32>
    %104 = math.exp %103 : vector<8x32xf32>
    %cst_45 = arith.constant 1.000000e+00 : f32
    %105 = vector.broadcast %cst_45 : f32 to vector<8x32xf32>
    %106 = arith.addf %105, %104 : vector<8x32xf32>
    %107 = tpu.reciprocal %106 {approx = true} : vector<8x32xf32> -> vector<8x32xf32>
    %108 = vector.extract_strided_slice %51 {offsets = [8, 0], sizes = [8, 32], strides = [1, 1]} : vector<56x32xf32> to vector<8x32xf32>
    %109 = vector.extract_strided_slice %89 {offsets = [0, 64], sizes = [8, 32], strides = [1, 1]} : vector<8x128xf32> to vector<8x32xf32>
    %110 = arith.addf %109, %53 : vector<8x32xf32>
    %111 = arith.mulf %98, %110 : vector<8x32xf32>
    %112 = arith.addf %108, %111 : vector<8x32xf32>
    %113 = math.tanh %112 : vector<8x32xf32>
    %cst_46 = arith.constant 1.000000e+00 : f32
    %114 = vector.broadcast %cst_46 : f32 to vector<8x32xf32>
    %115 = arith.subf %114, %107 : vector<8x32xf32>
    %116 = arith.mulf %115, %113 : vector<8x32xf32>
    %117 = arith.mulf %107, %87 : vector<8x32xf32>
    %118 = arith.addf %116, %117 : vector<8x32xf32>
    %119 = arith.truncf %118 : vector<8x32xf32> to vector<8x32xbf16>
    %cst_47 = arith.constant dense<0.000000e+00> : vector<8x128xf32>
    %120 = tpu.matmul %119, %25, %cst_47 {dimension_numbers = #tpu.dot_dimension_numbers<[1], [0], [0], [1], [0, 0, 1, 1], [], []>} : vector<8x32xbf16>, vector<32x128xbf16>, vector<8x128xf32> -> vector<8x128xf32>
    %121 = vector.extract_strided_slice %45 {offsets = [16, 0], sizes = [8, 32], strides = [1, 1]} : vector<56x32xf32> to vector<8x32xf32>
    %122 = vector.extract_strided_slice %120 {offsets = [0, 0], sizes = [8, 32], strides = [1, 1]} : vector<8x128xf32> to vector<8x32xf32>
    %123 = arith.addf %121, %122 : vector<8x32xf32>
    %cst_48 = arith.constant 0.000000e+00 : f32
    %124 = vector.broadcast %cst_48 : f32 to vector<8x32xf32>
    %125 = arith.subf %124, %123 : vector<8x32xf32>
    %126 = math.exp %125 : vector<8x32xf32>
    %cst_49 = arith.constant 1.000000e+00 : f32
    %127 = vector.broadcast %cst_49 : f32 to vector<8x32xf32>
    %128 = arith.addf %127, %126 : vector<8x32xf32>
    %129 = tpu.reciprocal %128 {approx = true} : vector<8x32xf32> -> vector<8x32xf32>
    %130 = vector.extract_strided_slice %48 {offsets = [16, 0], sizes = [8, 32], strides = [1, 1]} : vector<56x32xf32> to vector<8x32xf32>
    %131 = vector.extract_strided_slice %120 {offsets = [0, 32], sizes = [8, 32], strides = [1, 1]} : vector<8x128xf32> to vector<8x32xf32>
    %132 = arith.addf %130, %131 : vector<8x32xf32>
    %cst_50 = arith.constant 0.000000e+00 : f32
    %133 = vector.broadcast %cst_50 : f32 to vector<8x32xf32>
    %134 = arith.subf %133, %132 : vector<8x32xf32>
    %135 = math.exp %134 : vector<8x32xf32>
    %cst_51 = arith.constant 1.000000e+00 : f32
    %136 = vector.broadcast %cst_51 : f32 to vector<8x32xf32>
    %137 = arith.addf %136, %135 : vector<8x32xf32>
    %138 = tpu.reciprocal %137 {approx = true} : vector<8x32xf32> -> vector<8x32xf32>
    %139 = vector.extract_strided_slice %51 {offsets = [16, 0], sizes = [8, 32], strides = [1, 1]} : vector<56x32xf32> to vector<8x32xf32>
    %140 = vector.extract_strided_slice %120 {offsets = [0, 64], sizes = [8, 32], strides = [1, 1]} : vector<8x128xf32> to vector<8x32xf32>
    %141 = arith.addf %140, %53 : vector<8x32xf32>
    %142 = arith.mulf %129, %141 : vector<8x32xf32>
    %143 = arith.addf %139, %142 : vector<8x32xf32>
    %144 = math.tanh %143 : vector<8x32xf32>
    %cst_52 = arith.constant 1.000000e+00 : f32
    %145 = vector.broadcast %cst_52 : f32 to vector<8x32xf32>
    %146 = arith.subf %145, %138 : vector<8x32xf32>
    %147 = arith.mulf %146, %144 : vector<8x32xf32>
    %148 = arith.mulf %138, %118 : vector<8x32xf32>
    %149 = arith.addf %147, %148 : vector<8x32xf32>
    %150 = arith.truncf %149 : vector<8x32xf32> to vector<8x32xbf16>
    %cst_53 = arith.constant dense<0.000000e+00> : vector<8x128xf32>
    %151 = tpu.matmul %150, %25, %cst_53 {dimension_numbers = #tpu.dot_dimension_numbers<[1], [0], [0], [1], [0, 0, 1, 1], [], []>} : vector<8x32xbf16>, vector<32x128xbf16>, vector<8x128xf32> -> vector<8x128xf32>
    %152 = vector.extract_strided_slice %45 {offsets = [24, 0], sizes = [8, 32], strides = [1, 1]} : vector<56x32xf32> to vector<8x32xf32>
    %153 = vector.extract_strided_slice %151 {offsets = [0, 0], sizes = [8, 32], strides = [1, 1]} : vector<8x128xf32> to vector<8x32xf32>
    %154 = arith.addf %152, %153 : vector<8x32xf32>
    %cst_54 = arith.constant 0.000000e+00 : f32
    %155 = vector.broadcast %cst_54 : f32 to vector<8x32xf32>
    %156 = arith.subf %155, %154 : vector<8x32xf32>
    %157 = math.exp %156 : vector<8x32xf32>
    %cst_55 = arith.constant 1.000000e+00 : f32
    %158 = vector.broadcast %cst_55 : f32 to vector<8x32xf32>
    %159 = arith.addf %158, %157 : vector<8x32xf32>
    %160 = tpu.reciprocal %159 {approx = true} : vector<8x32xf32> -> vector<8x32xf32>
    %161 = vector.extract_strided_slice %48 {offsets = [24, 0], sizes = [8, 32], strides = [1, 1]} : vector<56x32xf32> to vector<8x32xf32>
    %162 = vector.extract_strided_slice %151 {offsets = [0, 32], sizes = [8, 32], strides = [1, 1]} : vector<8x128xf32> to vector<8x32xf32>
    %163 = arith.addf %161, %162 : vector<8x32xf32>
    %cst_56 = arith.constant 0.000000e+00 : f32
    %164 = vector.broadcast %cst_56 : f32 to vector<8x32xf32>
    %165 = arith.subf %164, %163 : vector<8x32xf32>
    %166 = math.exp %165 : vector<8x32xf32>
    %cst_57 = arith.constant 1.000000e+00 : f32
    %167 = vector.broadcast %cst_57 : f32 to vector<8x32xf32>
    %168 = arith.addf %167, %166 : vector<8x32xf32>
    %169 = tpu.reciprocal %168 {approx = true} : vector<8x32xf32> -> vector<8x32xf32>
    %170 = vector.extract_strided_slice %51 {offsets = [24, 0], sizes = [8, 32], strides = [1, 1]} : vector<56x32xf32> to vector<8x32xf32>
    %171 = vector.extract_strided_slice %151 {offsets = [0, 64], sizes = [8, 32], strides = [1, 1]} : vector<8x128xf32> to vector<8x32xf32>
    %172 = arith.addf %171, %53 : vector<8x32xf32>
    %173 = arith.mulf %160, %172 : vector<8x32xf32>
    %174 = arith.addf %170, %173 : vector<8x32xf32>
    %175 = math.tanh %174 : vector<8x32xf32>
    %cst_58 = arith.constant 1.000000e+00 : f32
    %176 = vector.broadcast %cst_58 : f32 to vector<8x32xf32>
    %177 = arith.subf %176, %169 : vector<8x32xf32>
    %178 = arith.mulf %177, %175 : vector<8x32xf32>
    %179 = arith.mulf %169, %149 : vector<8x32xf32>
    %180 = arith.addf %178, %179 : vector<8x32xf32>
    %181 = arith.truncf %180 : vector<8x32xf32> to vector<8x32xbf16>
    %cst_59 = arith.constant dense<0.000000e+00> : vector<8x128xf32>
    %182 = tpu.matmul %181, %25, %cst_59 {dimension_numbers = #tpu.dot_dimension_numbers<[1], [0], [0], [1], [0, 0, 1, 1], [], []>} : vector<8x32xbf16>, vector<32x128xbf16>, vector<8x128xf32> -> vector<8x128xf32>
    %183 = vector.extract_strided_slice %45 {offsets = [32, 0], sizes = [8, 32], strides = [1, 1]} : vector<56x32xf32> to vector<8x32xf32>
    %184 = vector.extract_strided_slice %182 {offsets = [0, 0], sizes = [8, 32], strides = [1, 1]} : vector<8x128xf32> to vector<8x32xf32>
    %185 = arith.addf %183, %184 : vector<8x32xf32>
    %cst_60 = arith.constant 0.000000e+00 : f32
    %186 = vector.broadcast %cst_60 : f32 to vector<8x32xf32>
    %187 = arith.subf %186, %185 : vector<8x32xf32>
    %188 = math.exp %187 : vector<8x32xf32>
    %cst_61 = arith.constant 1.000000e+00 : f32
    %189 = vector.broadcast %cst_61 : f32 to vector<8x32xf32>
    %190 = arith.addf %189, %188 : vector<8x32xf32>
    %191 = tpu.reciprocal %190 {approx = true} : vector<8x32xf32> -> vector<8x32xf32>
    %192 = vector.extract_strided_slice %48 {offsets = [32, 0], sizes = [8, 32], strides = [1, 1]} : vector<56x32xf32> to vector<8x32xf32>
    %193 = vector.extract_strided_slice %182 {offsets = [0, 32], sizes = [8, 32], strides = [1, 1]} : vector<8x128xf32> to vector<8x32xf32>
    %194 = arith.addf %192, %193 : vector<8x32xf32>
    %cst_62 = arith.constant 0.000000e+00 : f32
    %195 = vector.broadcast %cst_62 : f32 to vector<8x32xf32>
    %196 = arith.subf %195, %194 : vector<8x32xf32>
    %197 = math.exp %196 : vector<8x32xf32>
    %cst_63 = arith.constant 1.000000e+00 : f32
    %198 = vector.broadcast %cst_63 : f32 to vector<8x32xf32>
    %199 = arith.addf %198, %197 : vector<8x32xf32>
    %200 = tpu.reciprocal %199 {approx = true} : vector<8x32xf32> -> vector<8x32xf32>
    %201 = vector.extract_strided_slice %51 {offsets = [32, 0], sizes = [8, 32], strides = [1, 1]} : vector<56x32xf32> to vector<8x32xf32>
    %202 = vector.extract_strided_slice %182 {offsets = [0, 64], sizes = [8, 32], strides = [1, 1]} : vector<8x128xf32> to vector<8x32xf32>
    %203 = arith.addf %202, %53 : vector<8x32xf32>
    %204 = arith.mulf %191, %203 : vector<8x32xf32>
    %205 = arith.addf %201, %204 : vector<8x32xf32>
    %206 = math.tanh %205 : vector<8x32xf32>
    %cst_64 = arith.constant 1.000000e+00 : f32
    %207 = vector.broadcast %cst_64 : f32 to vector<8x32xf32>
    %208 = arith.subf %207, %200 : vector<8x32xf32>
    %209 = arith.mulf %208, %206 : vector<8x32xf32>
    %210 = arith.mulf %200, %180 : vector<8x32xf32>
    %211 = arith.addf %209, %210 : vector<8x32xf32>
    %212 = arith.truncf %211 : vector<8x32xf32> to vector<8x32xbf16>
    %cst_65 = arith.constant dense<0.000000e+00> : vector<8x128xf32>
    %213 = tpu.matmul %212, %25, %cst_65 {dimension_numbers = #tpu.dot_dimension_numbers<[1], [0], [0], [1], [0, 0, 1, 1], [], []>} : vector<8x32xbf16>, vector<32x128xbf16>, vector<8x128xf32> -> vector<8x128xf32>
    %214 = vector.extract_strided_slice %45 {offsets = [40, 0], sizes = [8, 32], strides = [1, 1]} : vector<56x32xf32> to vector<8x32xf32>
    %215 = vector.extract_strided_slice %213 {offsets = [0, 0], sizes = [8, 32], strides = [1, 1]} : vector<8x128xf32> to vector<8x32xf32>
    %216 = arith.addf %214, %215 : vector<8x32xf32>
    %cst_66 = arith.constant 0.000000e+00 : f32
    %217 = vector.broadcast %cst_66 : f32 to vector<8x32xf32>
    %218 = arith.subf %217, %216 : vector<8x32xf32>
    %219 = math.exp %218 : vector<8x32xf32>
    %cst_67 = arith.constant 1.000000e+00 : f32
    %220 = vector.broadcast %cst_67 : f32 to vector<8x32xf32>
    %221 = arith.addf %220, %219 : vector<8x32xf32>
    %222 = tpu.reciprocal %221 {approx = true} : vector<8x32xf32> -> vector<8x32xf32>
    %223 = vector.extract_strided_slice %48 {offsets = [40, 0], sizes = [8, 32], strides = [1, 1]} : vector<56x32xf32> to vector<8x32xf32>
    %224 = vector.extract_strided_slice %213 {offsets = [0, 32], sizes = [8, 32], strides = [1, 1]} : vector<8x128xf32> to vector<8x32xf32>
    %225 = arith.addf %223, %224 : vector<8x32xf32>
    %cst_68 = arith.constant 0.000000e+00 : f32
    %226 = vector.broadcast %cst_68 : f32 to vector<8x32xf32>
    %227 = arith.subf %226, %225 : vector<8x32xf32>
    %228 = math.exp %227 : vector<8x32xf32>
    %cst_69 = arith.constant 1.000000e+00 : f32
    %229 = vector.broadcast %cst_69 : f32 to vector<8x32xf32>
    %230 = arith.addf %229, %228 : vector<8x32xf32>
    %231 = tpu.reciprocal %230 {approx = true} : vector<8x32xf32> -> vector<8x32xf32>
    %232 = vector.extract_strided_slice %51 {offsets = [40, 0], sizes = [8, 32], strides = [1, 1]} : vector<56x32xf32> to vector<8x32xf32>
    %233 = vector.extract_strided_slice %213 {offsets = [0, 64], sizes = [8, 32], strides = [1, 1]} : vector<8x128xf32> to vector<8x32xf32>
    %234 = arith.addf %233, %53 : vector<8x32xf32>
    %235 = arith.mulf %222, %234 : vector<8x32xf32>
    %236 = arith.addf %232, %235 : vector<8x32xf32>
    %237 = math.tanh %236 : vector<8x32xf32>
    %cst_70 = arith.constant 1.000000e+00 : f32
    %238 = vector.broadcast %cst_70 : f32 to vector<8x32xf32>
    %239 = arith.subf %238, %231 : vector<8x32xf32>
    %240 = arith.mulf %239, %237 : vector<8x32xf32>
    %241 = arith.mulf %231, %211 : vector<8x32xf32>
    %242 = arith.addf %240, %241 : vector<8x32xf32>
    %243 = arith.truncf %242 : vector<8x32xf32> to vector<8x32xbf16>
    %cst_71 = arith.constant dense<0.000000e+00> : vector<8x128xf32>
    %244 = tpu.matmul %243, %25, %cst_71 {dimension_numbers = #tpu.dot_dimension_numbers<[1], [0], [0], [1], [0, 0, 1, 1], [], []>} : vector<8x32xbf16>, vector<32x128xbf16>, vector<8x128xf32> -> vector<8x128xf32>
    %245 = vector.extract_strided_slice %45 {offsets = [48, 0], sizes = [8, 32], strides = [1, 1]} : vector<56x32xf32> to vector<8x32xf32>
    %246 = vector.extract_strided_slice %244 {offsets = [0, 0], sizes = [8, 32], strides = [1, 1]} : vector<8x128xf32> to vector<8x32xf32>
    %247 = arith.addf %245, %246 : vector<8x32xf32>
    %cst_72 = arith.constant 0.000000e+00 : f32
    %248 = vector.broadcast %cst_72 : f32 to vector<8x32xf32>
    %249 = arith.subf %248, %247 : vector<8x32xf32>
    %250 = math.exp %249 : vector<8x32xf32>
    %cst_73 = arith.constant 1.000000e+00 : f32
    %251 = vector.broadcast %cst_73 : f32 to vector<8x32xf32>
    %252 = arith.addf %251, %250 : vector<8x32xf32>
    %253 = tpu.reciprocal %252 {approx = true} : vector<8x32xf32> -> vector<8x32xf32>
    %254 = vector.extract_strided_slice %48 {offsets = [48, 0], sizes = [8, 32], strides = [1, 1]} : vector<56x32xf32> to vector<8x32xf32>
    %255 = vector.extract_strided_slice %244 {offsets = [0, 32], sizes = [8, 32], strides = [1, 1]} : vector<8x128xf32> to vector<8x32xf32>
    %256 = arith.addf %254, %255 : vector<8x32xf32>
    %cst_74 = arith.constant 0.000000e+00 : f32
    %257 = vector.broadcast %cst_74 : f32 to vector<8x32xf32>
    %258 = arith.subf %257, %256 : vector<8x32xf32>
    %259 = math.exp %258 : vector<8x32xf32>
    %cst_75 = arith.constant 1.000000e+00 : f32
    %260 = vector.broadcast %cst_75 : f32 to vector<8x32xf32>
    %261 = arith.addf %260, %259 : vector<8x32xf32>
    %262 = tpu.reciprocal %261 {approx = true} : vector<8x32xf32> -> vector<8x32xf32>
    %263 = vector.extract_strided_slice %51 {offsets = [48, 0], sizes = [8, 32], strides = [1, 1]} : vector<56x32xf32> to vector<8x32xf32>
    %264 = vector.extract_strided_slice %244 {offsets = [0, 64], sizes = [8, 32], strides = [1, 1]} : vector<8x128xf32> to vector<8x32xf32>
    %265 = arith.addf %264, %53 : vector<8x32xf32>
    %266 = arith.mulf %253, %265 : vector<8x32xf32>
    %267 = arith.addf %263, %266 : vector<8x32xf32>
    %268 = math.tanh %267 : vector<8x32xf32>
    %cst_76 = arith.constant 1.000000e+00 : f32
    %269 = vector.broadcast %cst_76 : f32 to vector<8x32xf32>
    %270 = arith.subf %269, %262 : vector<8x32xf32>
    %271 = arith.mulf %270, %268 : vector<8x32xf32>
    %272 = arith.mulf %262, %242 : vector<8x32xf32>
    %273 = arith.addf %271, %272 : vector<8x32xf32>
    %cst_77 = arith.constant dense<0.000000e+00> : vector<8x32xf32>
    %274 = tpu.matmul %42, %7, %cst_77 {dimension_numbers = #tpu.dot_dimension_numbers<[1], [0], [0], [1], [0, 0, 1, 1], [], []>} : vector<8x8xbf16>, vector<8x32xbf16>, vector<8x32xf32> -> vector<8x32xf32>
    %275 = arith.truncf %273 : vector<8x32xf32> to vector<8x32xbf16>
    %cst_78 = arith.constant dense<0.000000e+00> : vector<8x32xf32>
    %276 = tpu.matmul %275, %9, %cst_78 {dimension_numbers = #tpu.dot_dimension_numbers<[1], [0], [0], [1], [0, 0, 1, 1], [], []>} : vector<8x32xbf16>, vector<32x32xbf16>, vector<8x32xf32> -> vector<8x32xf32>
    %277 = arith.addf %274, %276 : vector<8x32xf32>
    %278 = vector.broadcast %30 : vector<1x32xf32> to vector<8x32xf32>
    %279 = arith.addf %277, %278 : vector<8x32xf32>
    %280 = math.tanh %279 : vector<8x32xf32>
    %281 = tpu.concatenate %273, %280 in 0 : vector<8x32xf32>, vector<8x32xf32> -> vector<16x32xf32>
    %282 = arith.truncf %281 : vector<16x32xf32> to vector<16x32xbf16>
    %cst_79 = arith.constant dense<0.000000e+00> : vector<16x32xf32>
    %283 = tpu.matmul %282, %11, %cst_79 {dimension_numbers = #tpu.dot_dimension_numbers<[1], [0], [0], [1], [0, 0, 1, 1], [], []>} : vector<16x32xbf16>, vector<32x32xbf16>, vector<16x32xf32> -> vector<16x32xf32>
    %284 = vector.broadcast %31 : vector<1x32xf32> to vector<16x32xf32>
    %285 = arith.addf %283, %284 : vector<16x32xf32>
    %286 = math.tanh %285 : vector<16x32xf32>
    %287 = arith.truncf %286 : vector<16x32xf32> to vector<16x32xbf16>
    %cst_80 = arith.constant dense<0.000000e+00> : vector<16x32xf32>
    %288 = tpu.matmul %287, %13, %cst_80 {dimension_numbers = #tpu.dot_dimension_numbers<[1], [0], [0], [1], [0, 0, 1, 1], [], []>} : vector<16x32xbf16>, vector<32x32xbf16>, vector<16x32xf32> -> vector<16x32xf32>
    %289 = vector.broadcast %32 : vector<1x32xf32> to vector<16x32xf32>
    %290 = arith.addf %288, %289 : vector<16x32xf32>
    %291 = vector.extract_strided_slice %290 {offsets = [0, 0], sizes = [8, 32], strides = [1, 1]} : vector<16x32xf32> to vector<8x32xf32>
    %292 = vector.extract_strided_slice %290 {offsets = [8, 0], sizes = [8, 32], strides = [1, 1]} : vector<16x32xf32> to vector<8x32xf32>
    %293 = arith.subf %292, %291 : vector<8x32xf32>
    %cst_81 = arith.constant dense<0.000000e+00> : vector<8x32xf32>
    %294 = tpu.matmul %42, %15, %cst_81 {dimension_numbers = #tpu.dot_dimension_numbers<[1], [0], [0], [1], [0, 0, 1, 1], [], []>} : vector<8x8xbf16>, vector<8x32xbf16>, vector<8x32xf32> -> vector<8x32xf32>
    %295 = arith.truncf %292 : vector<8x32xf32> to vector<8x32xbf16>
    %cst_82 = arith.constant dense<0.000000e+00> : vector<8x32xf32>
    %296 = tpu.matmul %295, %17, %cst_82 {dimension_numbers = #tpu.dot_dimension_numbers<[1], [0], [0], [1], [0, 0, 1, 1], [], []>} : vector<8x32xbf16>, vector<32x32xbf16>, vector<8x32xf32> -> vector<8x32xf32>
    %297 = arith.addf %294, %296 : vector<8x32xf32>
    %298 = vector.broadcast %33 : vector<1x32xf32> to vector<8x32xf32>
    %299 = arith.addf %297, %298 : vector<8x32xf32>
    %300 = math.tanh %299 : vector<8x32xf32>
    %301 = arith.truncf %300 : vector<8x32xf32> to vector<8x32xbf16>
    %cst_83 = arith.constant dense<0.000000e+00> : vector<8x32xf32>
    %302 = tpu.matmul %301, %19, %cst_83 {dimension_numbers = #tpu.dot_dimension_numbers<[1], [0], [0], [1], [0, 0, 1, 1], [], []>} : vector<8x32xbf16>, vector<32x32xbf16>, vector<8x32xf32> -> vector<8x32xf32>
    %303 = vector.broadcast %34 : vector<1x32xf32> to vector<8x32xf32>
    %304 = arith.addf %302, %303 : vector<8x32xf32>
    %305 = arith.mulf %300, %300 : vector<8x32xf32>
    %cst_84 = arith.constant 1.000000e+00 : f32
    %306 = vector.broadcast %cst_84 : f32 to vector<8x32xf32>
    %307 = arith.subf %306, %305 : vector<8x32xf32>
    %308 = arith.mulf %55, %307 : vector<8x32xf32>
    %309 = arith.truncf %308 : vector<8x32xf32> to vector<8x32xbf16>
    %cst_85 = arith.constant dense<0.000000e+00> : vector<8x32xf32>
    %310 = tpu.matmul %309, %21, %cst_85 {dimension_numbers = #tpu.dot_dimension_numbers<[1], [0], [0], [1], [0, 0, 1, 1], [], []>} : vector<8x32xbf16>, vector<32x32xbf16>, vector<8x32xf32> -> vector<8x32xf32>
    %cst_86 = arith.constant dense<0.000000e+00> : vector<8x32xf32>
    %311 = tpu.matmul %309, %23, %cst_86 {dimension_numbers = #tpu.dot_dimension_numbers<[1], [0], [0], [1], [0, 0, 1, 1], [], []>} : vector<8x32xbf16>, vector<32x32xbf16>, vector<8x32xf32> -> vector<8x32xf32>
    %312 = vector.broadcast %36 : vector<1x32xf32> to vector<8x32xf32>
    %313 = arith.mulf %310, %312 : vector<8x32xf32>
    %314 = vector.broadcast %38 : vector<1x32xf32> to vector<8x32xf32>
    %315 = arith.subf %313, %314 : vector<8x32xf32>
    %316 = vector.broadcast %37 : vector<1x32xf32> to vector<8x32xf32>
    %317 = arith.mulf %315, %316 : vector<8x32xf32>
    %318 = arith.mulf %311, %293 : vector<8x32xf32>
    %cst_87 = arith.constant dense<0.000000e+00> : vector<8xf32>
    %319 = vector.multi_reduction <add>, %318, %cst_87 [1] : vector<8x32xf32> to vector<8xf32>
    %320 = vector.shape_cast %319 : vector<8xf32> to vector<8x1xf32>
    %cst_88 = arith.constant 0.000000e+00 : f32
    %321 = vector.broadcast %cst_88 : f32 to vector<8x1xf32>
    %322 = arith.subf %321, %320 : vector<8x1xf32>
    %c0_89 = arith.constant 0 : index
    %c0_90 = arith.constant 0 : index
    %323 = vector.load %arg4[%c0_89, %c0_90] : memref<40x32xf32, #tpu.memory_space<vmem>>, vector<8x32xf32>
    tpu.vector_store %arg4[%c0_89, %c0_90], %317 {strides = array<i32>} : memref<40x32xf32, #tpu.memory_space<vmem>>, vector<8x32xf32>,
    %c8_91 = arith.constant 8 : index
    %c0_92 = arith.constant 0 : index
    %324 = vector.load %arg4[%c8_91, %c0_92] : memref<40x32xf32, #tpu.memory_space<vmem>>, vector<8x32xf32>
    tpu.vector_store %arg4[%c8_91, %c0_92], %292 {strides = array<i32>} : memref<40x32xf32, #tpu.memory_space<vmem>>, vector<8x32xf32>,
    %c16_93 = arith.constant 16 : index
    %c0_94 = arith.constant 0 : index
    %325 = vector.load %arg4[%c16_93, %c0_94] : memref<40x32xf32, #tpu.memory_space<vmem>>, vector<8x32xf32>
    tpu.vector_store %arg4[%c16_93, %c0_94], %304 {strides = array<i32>} : memref<40x32xf32, #tpu.memory_space<vmem>>, vector<8x32xf32>,
    %326 = vector.shape_cast %322 : vector<8x1xf32> to vector<8x1xf32>
    %327 = vector.broadcast %326 : vector<8x1xf32> to vector<8x32xf32>
    %c24_95 = arith.constant 24 : index
    %c0_96 = arith.constant 0 : index
    %328 = vector.load %arg4[%c24_95, %c0_96] : memref<40x32xf32, #tpu.memory_space<vmem>>, vector<8x32xf32>
    tpu.vector_store %arg4[%c24_95, %c0_96], %327 {strides = array<i32>} : memref<40x32xf32, #tpu.memory_space<vmem>>, vector<8x32xf32>,
    %c32_97 = arith.constant 32 : index
    %c0_98 = arith.constant 0 : index
    %329 = vector.load %arg4[%c32_97, %c0_98] : memref<40x32xf32, #tpu.memory_space<vmem>>, vector<8x32xf32>
    tpu.vector_store %arg4[%c32_97, %c0_98], %293 {strides = array<i32>} : memref<40x32xf32, #tpu.memory_space<vmem>>, vector<8x32xf32>,
    return
  }
}

</mosaic_0001>

<bundles_post_ra>
// kernel: tcrnn2_pallas.1
= control target key start
LH: loop header
LB: loop body
LE: loop exit
PB: predicated region body
PF: predicated region fallthrough
CT: control target
= control target key end

     0   :  { %vm119_vm0 = vcmask 1043456   ;;  %vm106_vm1 = vcmask 64512   ;;  %v1640_v18 = vmov 0.0   ;;  %s1641_s17 = smov 64   ;;  %vm1642_vm2 = vmmov 0   ;;  %s1644_s23 = smov 96   ;;  %s2072_s1 = inlined_call_operand.vmem [shape: f32[264,32], index: 1, kind: input, shape index: {}]   ;;  %s2073_s0 = inlined_call_operand.vmem [shape: f32[64,8], index: 0, kind: input, shape index: {}]   ;;  %s2074_s2 = inlined_call_operand.vmem [shape: f32[32,128], index: 2, kind: input, shape index: {}]   ;;  %s2075_s3 = inlined_call_operand.vmem [shape: f32[16,32], index: 3, kind: input, shape index: {}]   ;;  %s2076_s4 = inlined_call_operand.vmem [shape: f32[40,32], index: 4, kind: output, shape index: {}]  }
   0x1   :  { %v20_v0 = vld [vmem:[%s2072_s1 + $0x8] sm:$0xff]  ;;  %v89_v1 = vld [vmem:[%s2073_s0] sm:$0xff]  ;;  %v91_v5 = vld [vmem:[%s2073_s0 + $0x10] sm:$0xff]  ;;  %v1643_v28 = vmov 0   ;;  %vm337_vm3 = vcmask 261120  }
   0x2   :  { %v90_v2 = vld [vmem:[%s2073_s0 + $0x8] sm:$0xff]  ;;  %v21_v3 = vpack.c.bf16 %v20_v0, %v20_v0  ;;  %v92_v6 = vld [vmem:[%s2073_s0 + $0x18] sm:$0xff]  ;;  %v70_v7 = vld [vmem:[%s2074_s2] sm:$0xff] }
   0x3   :  { %v96_v4 = vpack.c.bf16 %v90_v2, %v89_v1  ;;  %v71_v8 = vld [vmem:[%s2074_s2 + $0x8] sm:$0xff]  ;;  %v93_v9 = vld [vmem:[%s2073_s0 + $0x20] sm:$0xff]  ;;  %v97_v12 = vpack.c.bf16 %v92_v6, %v91_v5  ;;  %v22_v17 = vld [vmem:[%s2072_s1 + $0x10] sm:$0xff] }
   0x4   :  { %v94_v10 = vld [vmem:[%s2073_s0 + $0x28] sm:$0xff]  ;;  %1555 = vmatprep.subr.msk.bf16.mxu1 %vm119_vm0, %v21_v3  ;;  %v192_v11 = vsel %vm119_vm0, %v21_v3, 0  ;;  %v1700_v13 = vpack.c.bf16 %v71_v8, %v70_v7  ;;  %v18_v15 = vld [vmem:[%s2072_s1] sm:$0xff]  ;;  %v72_v19 = vld [vmem:[%s2074_s2 + $0x10] sm:$0xff]  ;;  %v23_v22 = vpack.c.bf16 %v22_v17, %v22_v17 }
   0x5   :  { %1412 = vmatprep.mubr.msk.bf16.mxu1 %vm106_vm1, %v96_v4  ;;  %1411 = vmatpush3.bf16.msra.mxu1 %v192_v11  ;;  %v98_v14 = vpack.c.bf16 %v94_v10, %v93_v9  ;;  %v1314_v16 = vld [vmem:[%s2075_s3 + $0x3] ss:$0 sm:$0xff]  ;;  %v73_v20 = vld [vmem:[%s2074_s2 + $0x18] sm:$0xff]  ;;  %v19_v21 = vpack.c.bf16 %v18_v15, %v18_v15  ;;  %v95_v24 = vld [vmem:[%s2073_s0 + $0x30] sm:$0xff] }
   0x6   :  { %1402 = vmatprep.mubr.msk.bf16.mxu0 %vm106_vm1, %v96_v4  ;;  %1430 = vmatprep.subr.bf16.mxu1 %v1640_v18  ;;  %v1728_v25 = vpack.c.bf16 %v73_v20, %v72_v19  ;;  %v263_v26 = vsel %vm119_vm0, %v23_v22, 0  ;;  %v99_v27 = vpack.c.bf16 %v95_v24, %v95_v24  ;;  %v1304_v29 = vld [vmem:[%s2075_s3 + $0x1] ss:$0 sm:$0xff]  ;;  %v1299_v38 = vld [vmem:[%s2075_s3] ss:$0 sm:$0xff] }
   0x7   :  { %398 = vrot.lane.b32.xlu0 %v1314_v16, %s1641_s17  ;;  %1554 = vmatprep.subr.msk.bf16.mxu0 %vm119_vm0, %v19_v21  ;;  %v121_v23 = vsel %vm119_vm0, %v19_v21, 0  ;;  %v1800_v11 = vld [vmem:[%s2075_s3 + $0x2] ss:$0 sm:$0xff] }
   0x8   :  { %1413 = vmatmul.mubr.msk.bf16.vlgmr.msra.gmra.mrb[0].mxu1 %vm106_vm1, %v97_v12  ;;  %1401 = vmatpush3.bf16.msra.mxu0 %v121_v23 }
   0x9   :  { %1431 = vmatpush3.bf16.msra.mxu1 %v1700_v13  ;;  %1416 = vmatprep.mubr.msk.bf16.mxu1 %vm106_vm1, %v98_v14 }
   0xa   :  { %1432 = vmatprep.subr.bf16.mxu1 %v1640_v18  ;;  %1556 = vmatprep.subr.msk.bf16.mxu0 %vm119_vm0, %v23_v22 }
   0xb   :  { %1403 = vmatmul.mubr.msk.bf16.vlgmr.msra.gmra.mrb[0].mxu0 %vm106_vm1, %v97_v12 }
   0xc   :  { %1406 = vmatprep.mubr.msk.bf16.mxu0 %vm106_vm1, %v98_v14  ;;  %1421 = vmatpush3.bf16.msra.mxu0 %v263_v26 }
   0xd   :  { %1433 = vmatpush3.bf16.msra.mxu1 %v1728_v25  ;;  %1446 = vmatprep.subr.bf16.mxu0 %v1640_v18 }
   0xe   :  { %1438 = vmatprep.subr.bf16.mxu1 %v1640_v18 }
  0x10   :  { %1417 = vmatmul.mubr.msk.bf16.gmra.mrb[4].mxu1 %vm106_vm1, %v99_v27 }
  0x11   :  { %1434 = vmatprep.mubr.msk.bf16.mxu1 %vm1642_vm2, %v1640_v18 }
  0x13   :  { %1407 = vmatmul.mubr.msk.bf16.gmra.mrb[4].mxu0 %vm106_vm1, %v99_v27 }
  0x14   :  { %1422 = vmatprep.mubr.msk.bf16.mxu0 %vm106_vm1, %v96_v4 }
  0x18   :  { %1435 = vmatmul.mubr.bf16.vlgmr.msra.gmra.mrb[8].mxu1 %v1643_v28 }
  0x19   :  { %1439 = vmatpush3.bf16.msra.mxu1 %v1700_v13  ;;  %1442 = vmatprep.mubr.msk.bf16.mxu1 %vm1642_vm2, %v1640_v18 }
  0x1a   :  { %1440 = vmatprep.subr.bf16.mxu1 %v1640_v18 }
  0x1b   :  { %1423 = vmatmul.mubr.msk.bf16.vlgmr.msra.gmra.mrb[8].mxu0 %vm106_vm1, %v97_v12 }
  0x1c   :  { %1447 = vmatpush3.bf16.msra.mxu0 %v1700_v13  ;;  %1426 = vmatprep.mubr.msk.bf16.mxu0 %vm106_vm1, %v98_v14 }
  0x1d   :  { %1441 = vmatpush3.bf16.msra.mxu1 %v1728_v25  ;;  %1448 = vmatprep.subr.bf16.mxu0 %v1640_v18 }
  0x1e   :  { %1454 = vmatprep.subr.bf16.mxu1 %v1640_v18 }
  0x20   :  { %1449 = vmatpush3.bf16.msra.mxu0 %v1728_v25 }
  0x21   :  { %1462 = vmatprep.subr.bf16.mxu0 %v1640_v18 }
  0x23   :  { %1427 = vmatmul.mubr.msk.bf16.gmra.mrb[12].mxu0 %vm106_vm1, %v99_v27 }
  0x24   :  { %1450 = vmatprep.mubr.msk.bf16.mxu0 %vm1642_vm2, %v1640_v18 }
  0x79   :  { %v1782_v54 = vpop.permute.xlu0 %398 }
  0xdb   :  { %v1414_v30 = vpop.f32.mrb[0].mxu1 }
  0xdc   :  { %v1761_v31 = vadd.f32 %v1414_v30, %v1304_v29  ;;  %v228_v32 = vpop.f32.mrb[1].mxu1 }
  0xdd   :  { %v1415_v33 = vpop.f32.mrb[2].mxu1  ;;  %v229_v12 = vadd.f32 %v1304_v29, %v228_v32 }
  0xde   :  { %v1763_v34 = vadd.f32 %v1415_v33, %v1304_v29  ;;  %v231_v35 = vpop.f32.mrb[3].mxu1  ;;  %v1404_v37 = vpop.f32.mrb[0].mxu0 }
  0xdf   :  { %v1765_v36 = vadd.f32 %v1304_v29, %v231_v35  ;;  %v1770_v39 = vadd.f32 %v1404_v37, %v1299_v38  ;;  %v157_v40 = vpop.f32.mrb[1].mxu0 }
  0xe0   :  { %v1405_v41 = vpop.f32.mrb[2].mxu0  ;;  %v158_v52 = vadd.f32 %v1299_v38, %v157_v40 }
  0xe1   :  { %v1772_v43 = vadd.f32 %v1405_v41, %v1299_v38  ;;  %v160_v44 = vpop.f32.mrb[3].mxu0 }
  0xe2   :  { %v1776_v47 = vadd.f32 %v1299_v38, %v160_v44 }
  0xe3   :  { %v1418_v42 = vpop.f32.mrb[4].mxu1 }
  0xe4   :  { %v1774_v45 = vadd.f32 %v1418_v42, %v1304_v29  ;;  %v244_v46 = vpop.f32.mrb[5].mxu1 }
  0xe5   :  { %v1778_v48 = vadd.f32 %v1304_v29, %v244_v46  ;;  %v1419_v49 = vpop.f32.mrb[6].mxu1 }
  0xe6   :  { %v247_v50 = vpop.f32.mrb[7].mxu1  ;;  %v1408_v53 = vpop.f32.mrb[4].mxu0 }
  0xe7   :  { %v1780_v51 = vadd.f32 %v1304_v29, %v247_v50  ;;  %v1784_v55 = vadd.f32 %v1408_v53, %v1299_v38  ;;  %v173_v56 = vpop.f32.mrb[5].mxu0 }
  0xe8   :  { %v1786_v57 = vadd.f32 %v1299_v38, %v173_v56  ;;  %v1409_v58 = vpop.f32.mrb[6].mxu0 }
  0xe9   :  { %v176_v60 = vpop.f32.mrb[7].mxu0 }
  0xea   :  { %v1790_v0 = vadd.f32 %v1299_v38, %v176_v60 }
  0xeb   :  { %v375_v59 = vpop.f32.mrb[8].mxu1 }
  0xec   :  { %v381_v61 = vadd.f32 %v375_v59, %v158_v52  ;;  %388 = vrot.lane.b32.xlu0 %v375_v59, %s1644_s23  ;;  %v1436_v62 = vpop.f32.mrb[9].mxu1  ;;  %v401_v63 = vadd.f32 %v1782_v54, %v375_v59 }
  0xed   :  { %v378_v1 = vpop.f32.mrb[10].mxu1 }
  0xee   :  { %403 = vrot.lane.b32.xlu1 %v401_v63, %s1641_s17  ;;  %v1437_v2 = vpop.f32.mrb[11].mxu1  ;;  %v1793_v3 = vpop.f32.mrb[8].mxu0  ;;  %v382_v7 = vsub.f32 0.0, %v381_v61 }
  0xef   :  { %v299_v4 = vpop.f32.mrb[9].mxu0 }
  0xf0   :  { %v1795_v5 = vpop.f32.mrb[10].mxu0  ;;  %v383_v8 = vmul.f32 1.442695, %v382_v7  ;;  %v300_v16 = vadd.f32 %v1800_v11, %v299_v4 }
  0xf1   :  { %v302_v6 = vpop.f32.mrb[11].mxu0 }
  0xf2   :  { %1562 = vpow2.f32 %v383_v8  ;;  %v303_v63 = vadd.f32 %v1800_v11, %v302_v6 }
  0xf6   :  { %v1814_v46 = vpop.f32.mrb[12].mxu0 }
  0xf7   :  { %v1816_v49 = vpop.f32.mrb[13].mxu0 }
  0xf8   :  { %v1429_v50 = vpop.f32.mrb[14].mxu0 }
  0xf9   :  { %v1818_v52 = vpop.f32.mrb[15].mxu0 }
  0xfc   :  { %v1563_v9 = vpop.eup %1562 }
  0xfd   :  { %v385_v10 = vadd.f32 1.0, %v1563_v9 }
  0xff   :  { %1564 = vrcp.f32 %v385_v10 }
 0x109   :  { %v1565_v17 = vpop.eup %1564 }
 0x15e   :  { %v389_v14 = vpop.permute.xlu0 %388 }
 0x15f   :  { %v391_v15 = vadd.f32 %v389_v14, %v229_v12 }
 0x160   :  { %v404_v19 = vpop.permute.xlu1 %403 }
 0x161   :  { %v392_v20 = vsub.f32 0.0, %v391_v15  ;;  %v406_v21 = vmul.f32 %v1565_v17, %v404_v19 }
 0x163   :  { %v393_v22 = vmul.f32 1.442695, %v392_v20  ;;  %v407_v23 = vadd.f32 %v406_v21, %v300_v16 }
 0x165   :  { %1566 = vpow2.f32 %v393_v22 }
 0x16f   :  { %v1567_v24 = vpop.eup %1566 }
 0x170   :  { %v395_v26 = vadd.f32 1.0, %v1567_v24 }
 0x172   :  { %1568 = vrcp.f32 %v395_v26 }
 0x173   :  { %1570 = vtanh.f32 %v407_v23 }
 0x17c   :  { %v1569_v27 = vpop.eup %1568 }
 0x17d   :  { %v409_v28 = vsub.f32 1.0, %v1569_v27  ;;  %v1571_v30 = vpop.eup %1570  ;;  %v411_v29 = vmul.f32 0.0, %v1569_v27 }
 0x17f   :  { %v410_v33 = vmul.f32 %v1571_v30, %v409_v28 }
 0x181   :  { %v412_v32 = vadd.f32 %v411_v29, %v410_v33 }
 0x183   :  { %v413_v35 = vpack.c.bf16 %v412_v32, %v412_v32 }
 0x185   :  { %1443 = vmatmul.mubr.msk.bf16.vlgmr.msra.gmra.mrb[12].mxu1 %vm337_vm3, %v413_v35 }
 0x186   :  { %1455 = vmatpush3.bf16.msra.mxu1 %v1700_v13  ;;  %1458 = vmatprep.mubr.msk.bf16.mxu1 %vm1642_vm2, %v1640_v18 }
 0x187   :  { %1456 = vmatprep.subr.bf16.mxu1 %v1640_v18 }
 0x18a   :  { %1457 = vmatpush3.bf16.msra.mxu1 %v1728_v25 }
 0x18b   :  { %1470 = vmatprep.subr.bf16.mxu1 %v1640_v18 }
 0x258   :  { %v451_v37 = vpop.f32.mrb[12].mxu1 }
 0x259   :  { %v457_v38 = vadd.f32 %v451_v37, %v1776_v47  ;;  %v473_v40 = vadd.f32 %v451_v37, %v1782_v54  ;;  %464 = vrot.lane.b32.xlu1 %v451_v37, %s1644_s23  ;;  %v1444_v41 = vpop.f32.mrb[13].mxu1 }
 0x25a   :  { %v454_v42 = vpop.f32.mrb[14].mxu1 }
 0x25b   :  { %475 = vrot.lane.b32.xlu0 %v473_v40, %s1641_s17  ;;  %v1445_v44 = vpop.f32.mrb[15].mxu1  ;;  %v458_v53 = vsub.f32 0.0, %v457_v38 }
 0x25d   :  { %v459_v56 = vmul.f32 1.442695, %v458_v53 }
 0x25f   :  { %1572 = vpow2.f32 %v459_v56 }
 0x269   :  { %v1573_v47 = vpop.eup %1572 }
 0x26a   :  { %v461_v58 = vadd.f32 1.0, %v1573_v47 }
 0x26c   :  { %1574 = vrcp.f32 %v461_v58 }
 0x276   :  { %v1575_v61 = vpop.eup %1574 }
 0x2cb   :  { %v465_v59 = vpop.permute.xlu1 %464 }
 0x2cc   :  { %v467_v60 = vadd.f32 %v465_v59, %v1765_v36 }
 0x2cd   :  { %v476_v62 = vpop.permute.xlu0 %475 }
 0x2ce   :  { %v468_v1 = vsub.f32 0.0, %v467_v60  ;;  %v478_v2 = vmul.f32 %v1575_v61, %v476_v62 }
 0x2d0   :  { %v469_v4 = vmul.f32 1.442695, %v468_v1  ;;  %v479_v7 = vadd.f32 %v478_v2, %v303_v63 }
 0x2d2   :  { %1576 = vpow2.f32 %v469_v4 }
 0x2dc   :  { %v1577_v8 = vpop.eup %1576 }
 0x2dd   :  { %v471_v9 = vadd.f32 1.0, %v1577_v8 }
 0x2df   :  { %1578 = vrcp.f32 %v471_v9 }
 0x2e0   :  { %1580 = vtanh.f32 %v479_v7 }
 0x2e9   :  { %v1579_v10 = vpop.eup %1578 }
 0x2ea   :  { %v481_v12 = vsub.f32 1.0, %v1579_v10  ;;  %v1581_v14 = vpop.eup %1580  ;;  %v483_v15 = vmul.f32 %v1579_v10, %v412_v32  ;;  %v308_v32 = vadd.f32 %v1793_v3, %v1800_v11 }
 0x2ec   :  { %v482_v16 = vmul.f32 %v1581_v14, %v481_v12  ;;  %v311_v12 = vadd.f32 %v1795_v5, %v1800_v11 }
 0x2ee   :  { %v484_v17 = vadd.f32 %v483_v15, %v482_v16 }
 0x2f0   :  { %v485_v36 = vpack.c.bf16 %v484_v17, %v484_v17 }
 0x2f2   :  { %1451 = vmatmul.mubr.msk.bf16.vlgmr.msra.gmra.mrb[16].mxu0 %vm337_vm3, %v485_v36 }
 0x2f3   :  { %1463 = vmatpush3.bf16.msra.mxu0 %v1700_v13  ;;  %1466 = vmatprep.mubr.msk.bf16.mxu0 %vm1642_vm2, %v1640_v18 }
 0x2f4   :  { %1464 = vmatprep.subr.bf16.mxu0 %v1640_v18 }
 0x2f7   :  { %1465 = vmatpush3.bf16.msra.mxu0 %v1728_v25 }
 0x2f8   :  { %1478 = vmatprep.subr.bf16.mxu0 %v1640_v18 }
 0x3c5   :  { %v523_v6 = vpop.f32.mrb[16].mxu0 }
 0x3c6   :  { %v529_v19 = vadd.f32 %v523_v6, %v1770_v39  ;;  %v545_v20 = vadd.f32 %v523_v6, %v1782_v54  ;;  %536 = vrot.lane.b32.xlu1 %v523_v6, %s1644_s23  ;;  %v1452_v21 = vpop.f32.mrb[17].mxu0 }
 0x3c7   :  { %v526_v22 = vpop.f32.mrb[18].mxu0 }
 0x3c8   :  { %547 = vrot.lane.b32.xlu0 %v545_v20, %s1641_s17  ;;  %v1453_v23 = vpop.f32.mrb[19].mxu0  ;;  %v530_v24 = vsub.f32 0.0, %v529_v19 }
 0x3ca   :  { %v531_v26 = vmul.f32 1.442695, %v530_v24 }
 0x3cc   :  { %1582 = vpow2.f32 %v531_v26 }
 0x3d6   :  { %v1583_v27 = vpop.eup %1582 }
 0x3d7   :  { %v533_v28 = vadd.f32 1.0, %v1583_v27 }
 0x3d9   :  { %1584 = vrcp.f32 %v533_v28 }
 0x3e3   :  { %v1585_v29 = vpop.eup %1584 }
 0x438   :  { %v537_v30 = vpop.permute.xlu1 %536 }
 0x439   :  { %v539_v33 = vadd.f32 %v537_v30, %v1761_v31 }
 0x43a   :  { %v548_v39 = vpop.permute.xlu0 %547 }
 0x43b   :  { %v540_v35 = vsub.f32 0.0, %v539_v33  ;;  %v550_v37 = vmul.f32 %v1585_v29, %v548_v39 }
 0x43d   :  { %v541_v38 = vmul.f32 1.442695, %v540_v35  ;;  %v551_v40 = vadd.f32 %v550_v37, %v308_v32 }
 0x43f   :  { %1586 = vpow2.f32 %v541_v38  ;;  %v316_v38 = vadd.f32 %v1800_v11, %v1816_v49 }
 0x449   :  { %v1587_v41 = vpop.eup %1586 }
 0x44a   :  { %v543_v42 = vadd.f32 1.0, %v1587_v41 }
 0x44c   :  { %1588 = vrcp.f32 %v543_v42 }
 0x44d   :  { %1590 = vtanh.f32 %v551_v40 }
 0x456   :  { %v1589_v44 = vpop.eup %1588 }
 0x457   :  { %v553_v50 = vsub.f32 1.0, %v1589_v44  ;;  %v1591_v53 = vpop.eup %1590  ;;  %v555_v47 = vmul.f32 %v1589_v44, %v484_v17 }
 0x459   :  { %v554_v56 = vmul.f32 %v1591_v53, %v553_v50 }
 0x45b   :  { %v556_v31 = vadd.f32 %v555_v47, %v554_v56 }
 0x45d   :  { %v557_v58 = vpack.c.bf16 %v556_v31, %v556_v31 }
 0x45f   :  { %1459 = vmatmul.mubr.msk.bf16.vlgmr.msra.gmra.mrb[16].mxu1 %vm337_vm3, %v557_v58 }
 0x460   :  { %1471 = vmatpush3.bf16.msra.mxu1 %v1700_v13  ;;  %1474 = vmatprep.mubr.msk.bf16.mxu1 %vm1642_vm2, %v1640_v18 }
 0x461   :  { %1472 = vmatprep.subr.bf16.mxu1 %v1640_v18 }
 0x464   :  { %1473 = vmatpush3.bf16.msra.mxu1 %v1728_v25 }
 0x465   :  { %1486 = vmatprep.subr.bf16.mxu1 %v1640_v18 }
 0x532   :  { %v595_v3 = vpop.f32.mrb[16].mxu1 }
 0x533   :  { %v601_v59 = vadd.f32 %v595_v3, %v1772_v43  ;;  %v617_v60 = vadd.f32 %v595_v3, %v1782_v54  ;;  %608 = vrot.lane.b32.xlu1 %v595_v3, %s1644_s23  ;;  %v1460_v61 = vpop.f32.mrb[17].mxu1 }
 0x534   :  { %v598_v62 = vpop.f32.mrb[18].mxu1 }
 0x535   :  { %619 = vrot.lane.b32.xlu0 %v617_v60, %s1641_s17  ;;  %v1461_v63 = vpop.f32.mrb[19].mxu1  ;;  %v602_v1 = vsub.f32 0.0, %v601_v59 }
 0x537   :  { %v603_v2 = vmul.f32 1.442695, %v602_v1 }
 0x539   :  { %1592 = vpow2.f32 %v603_v2 }
 0x543   :  { %v1593_v4 = vpop.eup %1592 }
 0x544   :  { %v605_v7 = vadd.f32 1.0, %v1593_v4 }
 0x546   :  { %1594 = vrcp.f32 %v605_v7 }
 0x550   :  { %v1595_v10 = vpop.eup %1594 }
 0x5a5   :  { %v609_v8 = vpop.permute.xlu1 %608 }
 0x5a6   :  { %v611_v9 = vadd.f32 %v609_v8, %v1763_v34 }
 0x5a7   :  { %v620_v43 = vpop.permute.xlu0 %619 }
 0x5a8   :  { %v612_v14 = vsub.f32 0.0, %v611_v9  ;;  %v622_v15 = vmul.f32 %v1595_v10, %v620_v43 }
 0x5aa   :  { %v613_v16 = vmul.f32 1.442695, %v612_v14  ;;  %v623_v17 = vadd.f32 %v622_v15, %v311_v12  ;;  %v319_v12 = vadd.f32 %v1800_v11, %v1818_v52 }
 0x5ac   :  { %1596 = vpow2.f32 %v613_v16 }
 0x5b6   :  { %v1597_v36 = vpop.eup %1596 }
 0x5b7   :  { %v615_v6 = vadd.f32 1.0, %v1597_v36 }
 0x5b9   :  { %1598 = vrcp.f32 %v615_v6 }
 0x5ba   :  { %1600 = vtanh.f32 %v623_v17 }
 0x5c3   :  { %v1599_v19 = vpop.eup %1598 }
 0x5c4   :  { %v625_v20 = vsub.f32 1.0, %v1599_v19  ;;  %v1601_v21 = vpop.eup %1600  ;;  %v627_v23 = vmul.f32 %v1599_v19, %v556_v31 }
 0x5c6   :  { %v626_v22 = vmul.f32 %v1601_v21, %v625_v20 }
 0x5c8   :  { %v628_v34 = vadd.f32 %v627_v23, %v626_v22 }
 0x5ca   :  { %v629_v24 = vpack.c.bf16 %v628_v34, %v628_v34 }
 0x5cc   :  { %1467 = vmatmul.mubr.msk.bf16.vlgmr.msra.gmra.mrb[20].mxu0 %vm337_vm3, %v629_v24 }
 0x5cd   :  { %1479 = vmatpush3.bf16.msra.mxu0 %v1700_v13  ;;  %1482 = vmatprep.mubr.msk.bf16.mxu0 %vm1642_vm2, %v1640_v18 }
 0x5ce   :  { %1480 = vmatprep.subr.bf16.mxu0 %v1640_v18 }
 0x5d1   :  { %1481 = vmatpush3.bf16.msra.mxu0 %v1728_v25 }
 0x5d2   :  { %1494 = vmatprep.subr.bf16.mxu0 %v1640_v18 }
 0x69f   :  { %v667_v5 = vpop.f32.mrb[20].mxu0 }
 0x6a0   :  { %v673_v26 = vadd.f32 %v667_v5, %v1786_v57  ;;  %v689_v27 = vadd.f32 %v667_v5, %v1782_v54  ;;  %680 = vrot.lane.b32.xlu1 %v667_v5, %s1644_s23  ;;  %v1468_v28 = vpop.f32.mrb[21].mxu0 }
 0x6a1   :  { %v670_v30 = vpop.f32.mrb[22].mxu0 }
 0x6a2   :  { %691 = vrot.lane.b32.xlu0 %v689_v27, %s1641_s17  ;;  %v1469_v13 = vpop.f32.mrb[23].mxu0  ;;  %v674_v33 = vsub.f32 0.0, %v673_v26  ;;  %v26_v30 = vld [vmem:[%s2072_s1 + $0x20] sm:$0xff] }
 0x6a3   :  { %v27_v13 = vld [vmem:[%s2072_s1 + $0x28] sm:$0xff] }
 0x6a4   :  { %v675_v29 = vmul.f32 1.442695, %v674_v33 }
 0x6a6   :  { %1602 = vpow2.f32 %v675_v29 }
 0x6b0   :  { %v1603_v39 = vpop.eup %1602 }
 0x6b1   :  { %v677_v32 = vadd.f32 1.0, %v1603_v39  ;;  %v28_v39 = vld [vmem:[%s2072_s1 + $0x30] sm:$0xff] }
 0x6b3   :  { %1604 = vrcp.f32 %v677_v32  ;;  %v29_v32 = vld [vmem:[%s2072_s1 + $0x38] sm:$0xff] }
 0x6bd   :  { %v1605_v37 = vpop.eup %1604 }
 0x712   :  { %v681_v25 = vpop.permute.xlu1 %680 }
 0x713   :  { %v683_v35 = vadd.f32 %v681_v25, %v1778_v48  ;;  %v100_v25 = vld [vmem:[%s2073_s0 + $0x38] sm:$0xff] }
 0x714   :  { %v692_v57 = vpop.permute.xlu0 %691 }
 0x715   :  { %v684_v40 = vsub.f32 0.0, %v683_v35  ;;  %v694_v41 = vmul.f32 %v1605_v37, %v692_v57  ;;  %v31_v35 = vpack.c.bf16 %v29_v32, %v28_v39  ;;  %v1901_v37 = vpack.c.bf16 %v100_v25, %v100_v25  ;;  %v47_v39 = vld [vmem:[%s2072_s1 + $0x90] sm:$0xff]  ;;  %v44_v32 = vld [vmem:[%s2072_s1 + $0x80] sm:$0xff] }
 0x717   :  { %v685_v42 = vmul.f32 1.442695, %v684_v40  ;;  %v695_v44 = vadd.f32 %v694_v41, %v316_v38 }
 0x719   :  { %1606 = vpow2.f32 %v685_v42 }
 0x723   :  { %v1607_v50 = vpop.eup %1606 }
 0x724   :  { %v687_v53 = vadd.f32 1.0, %v1607_v50 }
 0x726   :  { %1608 = vrcp.f32 %v687_v53 }
 0x727   :  { %1610 = vtanh.f32 %v695_v44 }
 0x730   :  { %v1609_v56 = vpop.eup %1608 }
 0x731   :  { %v697_v47 = vsub.f32 1.0, %v1609_v56  ;;  %v1611_v31 = vpop.eup %1610  ;;  %v699_v3 = vmul.f32 %v1609_v56, %v628_v34  ;;  %v324_v56 = vadd.f32 %v1814_v46, %v1800_v11 }
 0x733   :  { %v698_v58 = vmul.f32 %v1611_v31, %v697_v47 }
 0x735   :  { %v700_v48 = vadd.f32 %v699_v3, %v698_v58 }
 0x737   :  { %v701_v59 = vpack.c.bf16 %v700_v48, %v700_v48 }
 0x739   :  { %1475 = vmatmul.mubr.msk.bf16.vlgmr.msra.gmra.mrb[20].mxu1 %vm337_vm3, %v701_v59 }
 0x73a   :  { %1490 = vmatprep.mubr.msk.bf16.mxu1 %vm1642_vm2, %v1640_v18 }
 0x80c   :  { %v739_v49 = vpop.f32.mrb[20].mxu1 }
 0x80d   :  { %v745_v60 = vadd.f32 %v739_v49, %v1790_v0  ;;  %v761_v61 = vadd.f32 %v739_v49, %v1782_v54  ;;  %752 = vrot.lane.b32.xlu1 %v739_v49, %s1644_s23  ;;  %v1476_v62 = vpop.f32.mrb[21].mxu1 }
 0x80e   :  { %v742_v63 = vpop.f32.mrb[22].mxu1 }
 0x80f   :  { %763 = vrot.lane.b32.xlu0 %v761_v61, %s1641_s17  ;;  %v1477_v1 = vpop.f32.mrb[23].mxu1  ;;  %v746_v2 = vsub.f32 0.0, %v745_v60 }
 0x811   :  { %v747_v4 = vmul.f32 1.442695, %v746_v2 }
 0x813   :  { %1612 = vpow2.f32 %v747_v4 }
 0x81d   :  { %v1613_v7 = vpop.eup %1612 }
 0x81e   :  { %v749_v8 = vadd.f32 1.0, %v1613_v7  ;;  %v32_v7 = vld [vmem:[%s2072_s1 + $0x40] sm:$0xff] }
 0x820   :  { %1614 = vrcp.f32 %v749_v8  ;;  %v33_v8 = vld [vmem:[%s2072_s1 + $0x48] sm:$0xff] }
 0x82a   :  { %v1615_v43 = vpop.eup %1614 }
 0x87f   :  { %v753_v9 = vpop.permute.xlu1 %752 }
 0x880   :  { %v755_v10 = vadd.f32 %v753_v9, %v1780_v51  ;;  %v34_v9 = vld [vmem:[%s2072_s1 + $0x50] sm:$0xff] }
 0x881   :  { %v764_v0 = vpop.permute.xlu0 %763 }
 0x882   :  { %v756_v14 = vsub.f32 0.0, %v755_v10  ;;  %v766_v15 = vmul.f32 %v1615_v43, %v764_v0  ;;  %v36_v10 = vpack.c.bf16 %v33_v8, %v32_v7  ;;  %v35_v43 = vld [vmem:[%s2072_s1 + $0x58] sm:$0xff]  ;;  %v61_v7 = vld [vmem:[%s2072_s1 + $0xe0] sm:$0xff] }
 0x883   :  { %v37_v0 = vpack.c.bf16 %v35_v43, %v34_v9  ;;  %v1331_v9 = vld [vmem:[%s2075_s3 + $0x7] ss:$0 sm:$0xff] }
 0x884   :  { %v757_v16 = vmul.f32 1.442695, %v756_v14  ;;  %v767_v17 = vadd.f32 %v766_v15, %v319_v12  ;;  %v1324_v12 = vld [vmem:[%s2075_s3 + $0x4] ss:$0 sm:$0xff] }
 0x886   :  { %1616 = vpow2.f32 %v757_v16 }
 0x890   :  { %v1617_v36 = vpop.eup %1616 }
 0x891   :  { %v759_v6 = vadd.f32 1.0, %v1617_v36 }
 0x893   :  { %1618 = vrcp.f32 %v759_v6 }
 0x894   :  { %1620 = vtanh.f32 %v767_v17 }
 0x89d   :  { %v1619_v19 = vpop.eup %1618 }
 0x89e   :  { %v769_v20 = vsub.f32 1.0, %v1619_v19  ;;  %v1621_v21 = vpop.eup %1620  ;;  %v771_v23 = vmul.f32 %v1619_v19, %v700_v48 }
 0x8a0   :  { %v770_v22 = vmul.f32 %v1621_v21, %v769_v20  ;;  %v38_v21 = vld [vmem:[%s2072_s1 + $0x60] sm:$0xff] }
 0x8a2   :  { %v772_v51 = vadd.f32 %v771_v23, %v770_v22  ;;  %v39_v22 = vld [vmem:[%s2072_s1 + $0x68] sm:$0xff]  ;;  %v40_v23 = vld [vmem:[%s2072_s1 + $0x70] sm:$0xff] }
 0x8a4   :  { %v773_v34 = vpack.c.bf16 %v772_v51, %v772_v51 }
 0x8a6   :  { %1483 = vmatmul.mubr.msk.bf16.vlgmr.msra.gmra.mrb[24].mxu0 %vm337_vm3, %v773_v34  ;;  %v41_v34 = vld [vmem:[%s2072_s1 + $0x78] sm:$0xff] }
 0x8a7   :  { %1496 = vmatprep.mubr.msk.bf16.mxu0 %vm1642_vm2, %v1640_v18 }
 0x979   :  { %v811_v52 = vpop.f32.mrb[24].mxu0 }
 0x97a   :  { %v817_v24 = vadd.f32 %v811_v52, %v1784_v55  ;;  %v833_v5 = vadd.f32 %v811_v52, %v1782_v54  ;;  %824 = vrot.lane.b32.xlu1 %v811_v52, %s1644_s23  ;;  %v1484_v26 = vpop.f32.mrb[25].mxu0  ;;  %v24_v55 = vld [vmem:[%s2072_s1 + $0x18] sm:$0xff]  ;;  %v30_v54 = vpack.c.bf16 %v27_v13, %v26_v30  ;;  %v43_v52 = vpack.c.bf16 %v41_v34, %v40_v23  ;;  %v1315_v23 = vld [vmem:[%s2075_s3 + $0x9] ss:$0 sm:$0xff] }
 0x97b   :  { %v814_v27 = vpop.f32.mrb[26].mxu0  ;;  %v25_v33 = vpack.c.bf16 %v24_v55, %v24_v55 }
 0x97c   :  { %835 = vrot.lane.b32.xlu0 %v833_v5, %s1641_s17  ;;  %v1485_v28 = vpop.f32.mrb[27].mxu0  ;;  %1487 = vmatpush3.bf16.msra.mxu1 %v30_v54  ;;  %v818_v57 = vsub.f32 0.0, %v817_v24  ;;  %v1325_v24 = vld [vmem:[%s2075_s3 + $0x5] ss:$0 sm:$0xff] }
 0x97d   :  { %v893_v29 = vsel %vm119_vm0, %v25_v33, 0  ;;  %1488 = vmatprep.subr.bf16.mxu1 %v1640_v18 }
 0x97e   :  { %1495 = vmatpush3.bf16.msra.mxu0 %v893_v29  ;;  %v819_v38 = vmul.f32 1.442695, %v818_v57  ;;  %v46_v29 = vld [vmem:[%s2072_s1 + $0x88] sm:$0xff] }
 0x97f   :  { %1508 = vmatprep.subr.bf16.mxu0 %v1640_v18  ;;  %v50_v25 = vpack.c.bf16 %v47_v39, %v46_v29  ;;  %v1338_v39 = vld [vmem:[%s2075_s3 + $0xb] ss:$0 sm:$0xff] }
 0x980   :  { %1489 = vmatpush3.bf16.msra.mxu1 %v31_v35  ;;  %1622 = vpow2.f32 %v819_v38  ;;  %v45_v35 = vpack.c.bf16 %v44_v32, %v44_v32  ;;  %v48_v38 = vld [vmem:[%s2072_s1 + $0x98] sm:$0xff] }
 0x981   :  { %1497 = vmatmul.mubr.msk.bf16.vlgmr.msra.gmra.mrb[28].mxu0 %vm106_vm1, %v1901_v37  ;;  %1500 = vmatprep.subr.bf16.mxu1 %v1640_v18 }
 0x982   :  { %1512 = vmatprep.mubr.msk.bf16.mxu0 %vm1642_vm2, %v1640_v18  ;;  %v1087_v57 = vsel %vm119_vm0, %v45_v35, 0 }
 0x98a   :  { %v1623_v40 = vpop.eup %1622 }
 0x98b   :  { %v821_v41 = vadd.f32 1.0, %v1623_v40  ;;  %v49_v40 = vld [vmem:[%s2072_s1 + $0xa0] sm:$0xff] }
 0x98d   :  { %1624 = vrcp.f32 %v821_v41  ;;  %v51_v41 = vpack.c.bf16 %v49_v40, %v48_v38 }
 0x997   :  { %v1625_v50 = vpop.eup %1624 }
 0x9ec   :  { %v825_v42 = vpop.permute.xlu1 %824 }
 0x9ed   :  { %v827_v44 = vadd.f32 %v825_v42, %v1774_v45  ;;  %v1327_v42 = vld [vmem:[%s2075_s3 + $0x6] ss:$0 sm:$0xff] }
 0x9ee   :  { %v836_v53 = vpop.permute.xlu0 %835 }
 0x9ef   :  { %v828_v47 = vsub.f32 0.0, %v827_v44  ;;  %v838_v31 = vmul.f32 %v1625_v50, %v836_v53 }
 0x9f1   :  { %v829_v58 = vmul.f32 1.442695, %v828_v47  ;;  %v839_v3 = vadd.f32 %v838_v31, %v324_v56 }
 0x9f3   :  { %1626 = vpow2.f32 %v829_v58 }
 0x9fd   :  { %v1627_v48 = vpop.eup %1626 }
 0x9fe   :  { %v831_v59 = vadd.f32 1.0, %v1627_v48 }
 0xa00   :  { %1628 = vrcp.f32 %v831_v59 }
 0xa01   :  { %1630 = vtanh.f32 %v839_v3 }
 0xa0a   :  { %v1629_v49 = vpop.eup %1628 }
 0xa0b   :  { %v841_v60 = vsub.f32 1.0, %v1629_v49  ;;  %v1631_v61 = vpop.eup %1630  ;;  %v843_v63 = vmul.f32 %v1629_v49, %v772_v51  ;;  %v42_v51 = vpack.c.bf16 %v39_v22, %v38_v21  ;;  %v66_v21 = vld [vmem:[%s2072_s1 + $0xf8] sm:$0xff]  ;;  %v67_v22 = vld [vmem:[%s2072_s1 + $0x100] sm:$0xff] }
 0xa0c   :  { %v69_v34 = vpack.c.bf16 %v67_v22, %v66_v21 }
 0xa0d   :  { %v842_v62 = vmul.f32 %v1631_v61, %v841_v60  ;;  %1509 = vmatpush3.bf16.msra.mxu0 %v42_v51  ;;  %v52_v60 = vld [vmem:[%s2072_s1 + $0xa8] sm:$0xff]  ;;  %v53_v61 = vld [vmem:[%s2072_s1 + $0xb0] sm:$0xff] }
 0xa0e   :  { %1510 = vmatprep.subr.bf16.mxu0 %v1640_v18 }
 0xa0f   :  { %v844_v45 = vadd.f32 %v843_v63, %v842_v62  ;;  %v56_v62 = vpack.c.bf16 %v53_v61, %v52_v60  ;;  %v54_v63 = vld [vmem:[%s2072_s1 + $0xb8] sm:$0xff] }
 0xa11   :  { %v845_v1 = vpack.c.bf16 %v844_v45, %v844_v45  ;;  %1511 = vmatpush3.bf16.msra.mxu0 %v43_v52 }
 0xa12   :  { %1524 = vmatprep.subr.bf16.mxu0 %v1640_v18 }
 0xa13   :  { %1491 = vmatmul.mubr.msk.bf16.vlgmr.msra.gmra.mrb[24].mxu1 %vm337_vm3, %v845_v1 }
 0xa14   :  { %1504 = vmatprep.mubr.msk.bf16.mxu1 %vm1642_vm2, %v1640_v18  ;;  %1501 = vmatpush3.bf16.msra.mxu1 %v36_v10 }
 0xa15   :  { %1502 = vmatprep.subr.bf16.mxu1 %v1640_v18 }
 0xa18   :  { %1503 = vmatpush3.bf16.msra.mxu1 %v37_v0 }
 0xa19   :  { %1516 = vmatprep.subr.bf16.mxu1 %v1640_v18 }
 0xa54   :  { %v929_v11 = vpop.f32.mrb[28].mxu0 }
 0xa55   :  { %v1498_v46 = vpop.f32.mrb[29].mxu0 }
 0xa56   :  { %v932_v2 = vpop.f32.mrb[30].mxu0  ;;  %v59_v46 = vld [vmem:[%s2072_s1 + $0xd0] sm:$0xff] }
 0xa57   :  { %v1499_v4 = vpop.f32.mrb[31].mxu0 }
 0xa58   :  { %v60_v4 = vld [vmem:[%s2072_s1 + $0xd8] sm:$0xff] }
 0xa59   :  { %v63_v8 = vpack.c.bf16 %v61_v7, %v60_v4 }
 0xae6   :  { %v883_v14 = vpop.f32.mrb[24].mxu1 }
 0xae7   :  { %v930_v15 = vadd.f32 %v929_v11, %v883_v14  ;;  %v1492_v16 = vpop.f32.mrb[25].mxu1  ;;  %v58_v11 = vld [vmem:[%s2072_s1 + $0xc8] sm:$0xff] }
 0xae8   :  { %v886_v17 = vpop.f32.mrb[26].mxu1  ;;  %v62_v2 = vpack.c.bf16 %v59_v46, %v58_v11  ;;  %v64_v16 = vld [vmem:[%s2072_s1 + $0xe8] sm:$0xff] }
 0xae9   :  { %v939_v36 = vadd.f32 %v1324_v12, %v930_v15  ;;  %v1493_v6 = vpop.f32.mrb[27].mxu1  ;;  %v65_v17 = vld [vmem:[%s2072_s1 + $0xf0] sm:$0xff] }
 0xaea   :  { %v68_v6 = vpack.c.bf16 %v65_v17, %v64_v16 }
 0xaeb   :  { %1632 = vtanh.f32 %v939_v36 }
 0xaf5   :  { %v1633_v19 = vpop.eup %1632 }
 0xaf6   :  { %v941_v20 = vpack.c.bf16 %v1633_v19, %v844_v45  ;;  %v55_v45 = vld [vmem:[%s2072_s1 + $0xc0] sm:$0xff] }
 0xaf7   :  { %v57_v1 = vpack.c.bf16 %v55_v45, %v54_v63 }
 0xaf8   :  { %1505 = vmatmul.mubr.msk.bf16.vlgmr.msra.gmra.mrb[28].mxu1 %vm337_vm3, %v941_v20 }
 0xaf9   :  { %1520 = vmatprep.mubr.msk.bf16.mxu1 %vm1642_vm2, %v1640_v18  ;;  %1517 = vmatpush3.bf16.msra.mxu1 %v50_v25 }
 0xafa   :  { %1518 = vmatprep.subr.bf16.mxu1 %v1640_v18 }
 0xafd   :  { %1519 = vmatpush3.bf16.msra.mxu1 %v51_v41 }
 0xafe   :  { %1530 = vmatprep.subr.bf16.mxu1 %v1640_v18 }
 0xbcb   :  { %v983_v5 = vpop.f32.mrb[28].mxu1 }
 0xbcc   :  { %v984_v26 = vadd.f32 %v1325_v24, %v983_v5  ;;  %v1506_v27 = vpop.f32.mrb[29].mxu1  ;;  %v1332_v5 = vld [vmem:[%s2075_s3 + $0x8] ss:$0 sm:$0xff] }
 0xbcd   :  { %v986_v28 = vpop.f32.mrb[30].mxu1 }
 0xbce   :  { %v987_v30 = vadd.f32 %v1325_v24, %v986_v28  ;;  %v1507_v13 = vpop.f32.mrb[31].mxu1  ;;  %1634 = vtanh.f32 %v984_v26 }
 0xbcf   :  { %v1336_v13 = vld [vmem:[%s2075_s3 + $0xa] ss:$0 sm:$0xff] }
 0xbd0   :  { %1636 = vtanh.f32 %v987_v30 }
 0xbd8   :  { %v1635_v55 = vpop.eup %1634 }
 0xbda   :  { %v1637_v54 = vpop.eup %1636 }
 0xbdb   :  { %v992_v33 = vpack.c.bf16 %v1637_v54, %v1635_v55  ;;  %v1337_v55 = vld [vmem:[%s2075_s3 + $0xc] ss:$0 sm:$0xff] }
 0xbdd   :  { %1513 = vmatmul.mubr.msk.bf16.vlgmr.msra.gmra.mrb[32].mxu0 %vm337_vm3, %v992_v33 }
 0xbde   :  { %1526 = vmatprep.mubr.msk.bf16.mxu0 %vm1642_vm2, %v1640_v18  ;;  %1525 = vmatpush3.bf16.msra.mxu0 %v1087_v57 }
 0xbdf   :  { %1538 = vmatprep.subr.bf16.mxu0 %v1640_v18 }
 0xbe5   :  { %1527 = vmatmul.mubr.msk.bf16.vlgmr.msra.gmra.mrb[36].mxu0 %vm106_vm1, %v1901_v37 }
 0xbe6   :  { %1542 = vmatprep.mubr.msk.bf16.mxu0 %vm1642_vm2, %v1640_v18  ;;  %1539 = vmatpush3.bf16.msra.mxu0 %v62_v2 }
 0xbe7   :  { %1540 = vmatprep.subr.bf16.mxu0 %v1640_v18 }
 0xbea   :  { %1541 = vmatpush3.bf16.msra.mxu0 %v63_v8 }
 0xcb0   :  { %v1034_v44 = vpop.f32.mrb[32].mxu0 }
 0xcb1   :  { %v1514_v50 = vpop.f32.mrb[33].mxu0  ;;  %v1035_v56 = vadd.f32 %v1327_v42, %v1034_v44 }
 0xcb2   :  { %v1037_v53 = vpop.f32.mrb[34].mxu0 }
 0xcb3   :  { %v1038_v47 = vadd.f32 %v1327_v42, %v1037_v53  ;;  %v1515_v31 = vpop.f32.mrb[35].mxu0 }
 0xcb5   :  { %v1042_v58 = vpack.c.bf16 %v1038_v47, %v1038_v47  ;;  %1291 = vst.msk [vmem:[%s2076_s4 + $0x8] sm:$0xff] %vm337_vm3, %v1038_v47  ;;  %v1985_v37 = vsub.f32 %v1038_v47, %v1035_v56 }
 0xcb7   :  { %1521 = vmatmul.mubr.msk.bf16.vlgmr.msra.gmra.mrb[32].mxu1 %vm337_vm3, %v1042_v58  ;;  %1294 = vst.msk [vmem:[%s2076_s4 + $0x20] sm:$0xff] %vm337_vm3, %v1985_v37 }
 0xcb8   :  { %1534 = vmatprep.mubr.msk.bf16.mxu1 %vm1642_vm2, %v1640_v18  ;;  %v1123_v3 = vpop.f32.mrb[36].mxu0  ;;  %1531 = vmatpush3.bf16.msra.mxu1 %v56_v62 }
 0xcb9   :  { %v1528_v48 = vpop.f32.mrb[37].mxu0  ;;  %1532 = vmatprep.subr.bf16.mxu1 %v1640_v18 }
 0xcba   :  { %v1126_v59 = vpop.f32.mrb[38].mxu0 }
 0xcbb   :  { %v1529_v49 = vpop.f32.mrb[39].mxu0 }
 0xcbc   :  { %1533 = vmatpush3.bf16.msra.mxu1 %v57_v1 }
 0xcbd   :  { %1546 = vmatprep.subr.bf16.mxu1 %v1640_v18 }
 0xd8a   :  { %v1080_v10 = vpop.f32.mrb[32].mxu1 }
 0xd8b   :  { %v1124_v43 = vadd.f32 %v1123_v3, %v1080_v10  ;;  %v1522_v0 = vpop.f32.mrb[33].mxu1 }
 0xd8c   :  { %v1083_v12 = vpop.f32.mrb[34].mxu1 }
 0xd8d   :  { %v1133_v14 = vadd.f32 %v1331_v9, %v1124_v43  ;;  %v1523_v15 = vpop.f32.mrb[35].mxu1 }
 0xd8f   :  { %1638 = vtanh.f32 %v1133_v14 }
 0xd99   :  { %v1639_v36 = vpop.eup %1638 }
 0xd9a   :  { %v1183_v19 = vmul.f32 %v1639_v36, %v1639_v36  ;;  %v1135_v20 = vpack.c.bf16 %v1639_v36, %v1639_v36 }
 0xd9c   :  { %1535 = vmatmul.mubr.msk.bf16.vlgmr.msra.gmra.mrb[36].mxu1 %vm337_vm3, %v1135_v20  ;;  %v1184_v51 = vsub.f32 1.0, %v1183_v19 }
 0xd9d   :  { %1547 = vmatpush3.bf16.msra.mxu1 %v68_v6  ;;  %1550 = vmatprep.mubr.msk.bf16.mxu1 %vm1642_vm2, %v1640_v18 }
 0xd9e   :  { %1548 = vmatprep.subr.bf16.mxu1 %v1640_v18  ;;  %v1185_v52 = vmul.f32 %v1315_v23, %v1184_v51 }
 0xda0   :  { %v1186_v24 = vpack.c.bf16 %v1185_v52, %v1185_v52 }
 0xda1   :  { %1549 = vmatpush3.bf16.msra.mxu1 %v69_v34 }
 0xda2   :  { %1543 = vmatmul.mubr.msk.bf16.vlgmr.msra.gmra.mrb[40].mxu0 %vm337_vm3, %v1186_v24 }
 0xda4   :  { %1551 = vmatmul.mubr.msk.bf16.vlgmr.msra.gmra.mrb[40].mxu1 %vm337_vm3, %v1186_v24 }
 0xe6f   :  { %v1177_v26 = vpop.f32.mrb[36].mxu1 }
 0xe70   :  { %v1178_v27 = vadd.f32 %v1332_v5, %v1177_v26  ;;  %v1536_v28 = vpop.f32.mrb[37].mxu1 }
 0xe71   :  { %v1180_v30 = vpop.f32.mrb[38].mxu1 }
 0xe72   :  { %1292 = vst.msk [vmem:[%s2076_s4 + $0x10] sm:$0xff] %vm337_vm3, %v1178_v27  ;;  %v1537_v18 = vpop.f32.mrb[39].mxu1 }
 0xe75   :  { %v1224_v54 = vpop.f32.mrb[40].mxu0 }
 0xe76   :  { %v1274_v33 = vmul.f32 %v1336_v13, %v1224_v54  ;;  %v1544_v29 = vpop.f32.mrb[41].mxu0 }
 0xe77   :  { %v1227_v32 = vpop.f32.mrb[42].mxu0  ;;  %v1264_v25 = vpop.f32.mrb[40].mxu1 }
 0xe78   :  { %v1279_v35 = vsub.f32 %v1274_v33, %v1337_v55  ;;  %v1285_v57 = vmul.f32 %v1264_v25, %v1985_v37  ;;  %v1545_v38 = vpop.f32.mrb[43].mxu0  ;;  %v1552_v40 = vpop.f32.mrb[41].mxu1 }
 0xe79   :  { %v1267_v41 = vpop.f32.mrb[42].mxu1 }
 0xe7a   :  { %v1284_v42 = vmul.f32 %v1338_v39, %v1279_v35  ;;  %v1553_v44 = vpop.f32.mrb[43].mxu1  ;;  %v1286_v50 = vsel %vm337_vm3, %v1285_v57, 0.0 }
 0xe7b   :  { %1287 = vadd.xlane.f32.xlu1 %v1286_v50 }
 0xe7c   :  { %1290 = vst.msk [vmem:[%s2076_s4] sm:$0xff] %vm337_vm3, %v1284_v42 }
 0xf08   :  { %v1288_v53 = vpop.xlane.xlu1 %1287 }
 0xf09   :  { %v1289_v56 = vsub.f32 0.0, %v1288_v53 }
 0xf0b   :  { %1293 = vst.msk [vmem:[%s2076_s4 + $0x18] sm:$0xff] %vm337_vm3, %v1289_v56 }

</bundles_post_ra>
